<compile_context>
chip_gen: v7x
topology: tpu7x:2x2x1
jax: 0.10.0
libtpu: 0.0.40
codegen_flags: <defaults>
</compile_context>

<pallas_src>
import jax
import jax.numpy as jnp
from jax.experimental import pallas as pl
from jax.experimental.pallas import tpu as pltpu

_MIB = 1024 * 1024


# ---------------------------------------------------------------------------
# Small helpers
# ---------------------------------------------------------------------------

def _round_up(x: int, m: int) -> int:
    return ((x + m - 1) // m) * m


def _tpu_vmem_capacity() -> int:
    """Physical VMEM bytes for this generation (128 MiB v5e/v6e, 64 MiB v7x)."""
    try:
        cap = int(getattr(pltpu.get_tpu_info(), "vmem_capacity_bytes"))
        if cap > 0:
            return cap
    except Exception:
        pass
    return 64 * _MIB  # conservative default (matches v7x per-core VMEM)


# ---------------------------------------------------------------------------
# Kernel bodies
# ---------------------------------------------------------------------------

def _classifier_head(pooled, w_ref, b_ref, labels_ref, logits_ref, nll_ref,
                     num_labels):
    """Shared head: pooled [tb, H] -> logits [tb, Lp] (+ per-example NLL)."""
    # MXU matmul in the input dtype with f32 accumulation.
    logits = jnp.dot(pooled, w_ref[...], preferred_element_type=jnp.float32)
    logits = logits + b_ref[...]                                   # f32 bias
    logits_ref[...] = logits.astype(logits_ref.dtype)

    if labels_ref is not None:
        col = jax.lax.broadcasted_iota(jnp.int32, logits.shape, 1)  # [tb, Lp]
        # Mask zero-padded label columns out of the CE (they carry logit 0.0).
        if num_labels < logits.shape[-1]:
            ce = jnp.where(col < num_labels, logits, -1e30)
        else:
            ce = logits
        labels = labels_ref[...]                                    # [tb, 1]
        m = jnp.max(ce, axis=-1, keepdims=True)
        lse = m + jnp.log(jnp.sum(jnp.exp(ce - m), axis=-1, keepdims=True))
        # NOTE: labels >= num_labels produce a huge NLL instead of raising like
        # torch.nn.CrossEntropyLoss; labels < 0 (ignore_index) are masked by
        # the wrapper before the mean.
        picked = jnp.sum(jnp.where(col == labels, ce, 0.0),
                         axis=-1, keepdims=True)
        nll_ref[...] = lse - picked


def _make_maxpool_kernel(with_labels: bool, num_labels: int):
    """Streamed max-pool over seq tiles + fused classifier at the last step."""

    def kernel(*refs):
        if with_labels:
            hs_ref, w_ref, b_ref, labels_ref, logits_ref, nll_ref, acc_ref = refs
        else:
            hs_ref, w_ref, b_ref, logits_ref, acc_ref = refs
            labels_ref = nll_ref = None

        s = pl.program_id(1)

        @pl.when(s == 0)
        def _init():
            acc_ref[...] = jnp.full(acc_ref.shape, -jnp.inf, dtype=acc_ref.dtype)

        # Running max over the streamed [tb, ts, H] tile, kept in the input
        # dtype (max is order-preserving; no f32 upcast -> fewer store bytes,
        # lower vreg pressure, which matters most on v5e).
        acc_ref[...] = jnp.maximum(acc_ref[...], jnp.max(hs_ref[...], axis=1))

        @pl.when(s == pl.num_programs(1) - 1)
        def _finalize():
            _classifier_head(acc_ref[...], w_ref, b_ref, labels_ref,
                             logits_ref, nll_ref, num_labels)

    return kernel


def _make_cls_kernel(with_labels: bool, num_labels: int):
    """Classifier head on pre-selected CLS rows [tb, H]."""

    def kernel(*refs):
        if with_labels:
            cls_ref, w_ref, b_ref, labels_ref, logits_ref, nll_ref = refs
        else:
            cls_ref, w_ref, b_ref, logits_ref = refs
            labels_ref = nll_ref = None
        _classifier_head(cls_ref[...], w_ref, b_ref, labels_ref,
                         logits_ref, nll_ref, num_labels)

    return kernel


# ---------------------------------------------------------------------------
# Tile selection (generation-aware; respects the (8, 128) block constraint)
# ---------------------------------------------------------------------------

def _normalize_batch_tile(B, t):
    if t is None:
        return None
    t = int(t)
    if t <= 0:
        return None
    t = min(t, B)
    if t == B or t % 8 == 0:
        return t
    return None


def _normalize_seq_tile(t):
    if t is None:
        return None
    t = int(t)
    return t if (t >= 8 and t % 8 == 0) else None


def _pick_batch_tile(B: int, cap: int = 128) -> int:
    # Guarantee >= 2 blocks on the "parallel" batch axis when B >= 16 so both
    # v7x TensorCores get work; v5e/v6e (1 TC) are unaffected.
    if B < 16:
        return B
    return min(cap, max(8, ((B // 2) // 8) * 8))


def _stream_tile_budget(vmem_cap: int, fixed_bytes: int) -> int:
    # Total residency target: <= ~36 MiB on 128 MiB parts (v5e/v6e), ~28 MiB on
    # the 64 MiB v7x. Two streamed (double-buffered) tiles share what is left
    # after the resident weight / accumulator / outputs; each tile is capped at
    # 16 MiB (>= 95% of HBM roofline vs the ~0.35 us/step fixed overhead).
    resident_target = max(min(vmem_cap // 2 - 4 * _MIB, 36 * _MIB), 8 * _MIB)
    per_buf = (resident_target - fixed_bytes) // 2
    return int(min(max(per_buf, _MIB), 16 * _MIB))


def _pick_seq_tile(S: int, tb: int, H: int, itemsize: int,
                   budget_bytes: int) -> int:
    row_bytes = max(tb * H * itemsize, 1)
    cap = max(((budget_bytes // row_bytes) // 8) * 8, 8)
    return min(cap, _round_up(S, 8))


# ---------------------------------------------------------------------------
# Wrapper (forward of ModelForTokenClassification, post-backbone)
# ---------------------------------------------------------------------------

def model_for_token_classification_forward(hidden_states,
                                            weight,
                                            bias,
                                            labels=None,
                                            aggregation: str = "max_pooling",
                                            batch_tile=None,
                                            seq_tile=None):
    """Pallas equivalent of ModelForTokenClassification.forward (post-backbone).

    Args:
      hidden_states: [B, S, H] float — backbone last_hidden_state.
      weight:        [H, L] float — classifier weight (transposed vs. torch
                     Linear; head_scale == 1).
      bias:          [L] float — classifier bias.
      labels:        optional [B] int — class labels (rows with label < 0 are
                     ignored, matching nn.CrossEntropyLoss's ignore_index).
      aggregation:   'max_pooling' or 'cls' (anything else falls back to 'cls',
                     mirroring the PyTorch module).

    Returns:
      dict(loss=<scalar or None>, logits=[B, L] float32)
    """
    B, S, H = hidden_states.shape
    Hw, L = weight.shape
    if Hw != H:
        raise ValueError("classifier weight must be [hidden_size, num_labels] "
                         "(head_scale == 1).")
    dt = hidden_states.dtype
    itemsize = jnp.dtype(dt).itemsize
    w_itemsize = jnp.dtype(weight.dtype).itemsize
    with_labels = labels is not None

    # Lane-dense classifier: zero-pad num_labels up to a multiple of 128 so the
    # logits stores are unmasked vst and the MXU N dim is not 16-32x underfilled.
    Lp = _round_up(max(L, 1), 128)
    weight_p = jnp.pad(weight, ((0, 0), (0, Lp - L))) if Lp != L else weight
    bias_p = jnp.pad(bias, (0, Lp - L)) if Lp != L else bias
    bias2d = bias_p.reshape(1, Lp).astype(jnp.float32)

    vmem_cap = _tpu_vmem_capacity()
    vmem_limit = int((vmem_cap * 3) // 4)    # 96 MiB on v5e/v6e, 48 MiB on v7x

    if aggregation == "max_pooling":
        tb = _normalize_batch_tile(B, batch_tile)
        if tb is None:
            tb = _pick_batch_tile(B)
        B_pad = _round_up(B, tb)
        n_b = B_pad // tb

        fixed_bytes = (H * Lp * w_itemsize        # resident weight (1 buffer)
                       + Lp * 4                   # bias
                       + tb * H * itemsize        # running-max accumulator
                       + 2 * tb * Lp * 4          # logits out (2 buffers)
                       + 4 * tb * 128 * 4)        # nll out + labels (lane pad)
        ts = _normalize_seq_tile(seq_tile)
        if ts is None:
            ts = _pick_seq_tile(S, tb, H, itemsize,
                                _stream_tile_budget(vmem_cap, fixed_bytes))
        ts = min(ts, _round_up(S, 8))
        S_pad = _round_up(S, ts)
        n_s = S_pad // ts

        # Pad upstream instead of whole-dimension fallback blocks: extra batch
        # rows are zeros (sliced off afterwards), extra sequence rows are the
        # most negative finite value so they never win the running max.
        hs = hidden_states
        if B_pad != B:
            hs = jnp.pad(hs, ((0, B_pad - B), (0, 0), (0, 0)))
        if S_pad != S:
            neg = float(jnp.finfo(dt).min)
            hs = jnp.pad(hs, ((0, 0), (0, S_pad - S), (0, 0)),
                         constant_values=neg)

        if with_labels:
            labels2d = jnp.pad(labels.astype(jnp.int32), (0, B_pad - B),
                               constant_values=-1).reshape(B_pad, 1)
            out_shape = (jax.ShapeDtypeStruct((B_pad, Lp), jnp.float32),
                         jax.ShapeDtypeStruct((B_pad, 1), jnp.float32))
        else:
            out_shape = jax.ShapeDtypeStruct((B_pad, Lp), jnp.float32)

        cost = pl.CostEstimate(
            flops=int(2 * B_pad * H * Lp + B_pad * S_pad * H),
            transcendentals=int(B_pad * Lp) if with_labels else 0,
            bytes_accessed=int(B_pad * S_pad * H * itemsize
                               + H * Lp * w_itemsize + B_pad * Lp * 4))

        def _launch(single_buffer_invariants):
            def inv_spec(shape, imap):
                if single_buffer_invariants:
                    # Grid-invariant operands: no point double-buffering them;
                    # the reclaimed VMEM goes to larger streamed seq tiles.
                    return pl.BlockSpec(shape, imap,
                                        pipeline_mode=pl.Buffered(1))
                return pl.BlockSpec(shape, imap)

            in_specs = [
                pl.BlockSpec((tb, ts, H), lambda b, s: (b, s, 0)),  # streamed
                inv_spec((H, Lp), lambda b, s: (0, 0)),             # weight
                inv_spec((1, Lp), lambda b, s: (0, 0)),             # bias
            ]
            args = [hs, weight_p, bias2d]
            if with_labels:
                in_specs.append(pl.BlockSpec((tb, 1), lambda b, s: (b, 0)))
                args.append(labels2d)
                out_specs = (pl.BlockSpec((tb, Lp), lambda b, s: (b, 0)),
                             pl.BlockSpec((tb, 1), lambda b, s: (b, 0)))
            else:
                out_specs = pl.BlockSpec((tb, Lp), lambda b, s: (b, 0))

            return pl.pallas_call(
                _make_maxpool_kernel(with_labels, L),
                out_shape=out_shape,
                grid=(n_b, n_s),                    # reduction (seq) axis last
                in_specs=in_specs,
                out_specs=out_specs,
                scratch_shapes=[pltpu.VMEM((tb, H), dt)],
                compiler_params=pltpu.CompilerParams(
                    dimension_semantics=("parallel", "arbitrary"),
                    vmem_limit_bytes=vmem_limit),
                cost_estimate=cost,
            )(*args)

        try:
            outs = _launch(True)
        except Exception:
            # TODO(synk): fall back if this Pallas build rejects
            # pipeline_mode=pl.Buffered(1) on the grid-invariant operands.
            outs = _launch(False)

    else:
        # 'cls' (and the PyTorch default fallback): only seq position 0 is ever
        # read, so slice it in the wrapper — only [B, H] crosses HBM. This path
        # is step-overhead bound, so run it as a single grid point unless the
        # slab itself would not sit comfortably in VMEM.
        cls_rows = hidden_states[:, 0, :]                           # [B, H]
        tb = _normalize_batch_tile(B, batch_tile)
        if tb is None:
            if B * H * itemsize <= 8 * _MIB:
                tb = B
            else:
                tb = max(8, (((8 * _MIB) // max(H * itemsize, 1)) // 8) * 8)
                tb = min(tb, _round_up(B, 8))
        B_pad = _round_up(B, tb)
        n_b = B_pad // tb
        if B_pad != B:
            cls_rows = jnp.pad(cls_rows, ((0, B_pad - B), (0, 0)))

        if with_labels:
            labels2d = jnp.pad(labels.astype(jnp.int32), (0, B_pad - B),
                               constant_values=-1).reshape(B_pad, 1)
            out_shape = (jax.ShapeDtypeStruct((B_pad, Lp), jnp.float32),
                         jax.ShapeDtypeStruct((B_pad, 1), jnp.float32))
        else:
            out_shape = jax.ShapeDtypeStruct((B_pad, Lp), jnp.float32)

        cost = pl.CostEstimate(
            flops=int(2 * B_pad * H * Lp),
            transcendentals=int(B_pad * Lp) if with_labels else 0,
            bytes_accessed=int(B_pad * H * itemsize + H * Lp * w_itemsize
                               + B_pad * Lp * 4))

        def _launch(single_buffer_invariants):
            def inv_spec(shape, imap):
                if single_buffer_invariants:
                    return pl.BlockSpec(shape, imap,
                                        pipeline_mode=pl.Buffered(1))
                return pl.BlockSpec(shape, imap)

            in_specs = [
                pl.BlockSpec((tb, H), lambda b: (b, 0)),
                inv_spec((H, Lp), lambda b: (0, 0)),
                inv_spec((1, Lp), lambda b: (0, 0)),
            ]
            args = [cls_rows, weight_p, bias2d]
            if with_labels:
                in_specs.append(pl.BlockSpec((tb, 1), lambda b: (b, 0)))
                args.append(labels2d)
                out_specs = (pl.BlockSpec((tb, Lp), lambda b: (b, 0)),
                             pl.BlockSpec((tb, 1), lambda b: (b, 0)))
            else:
                out_specs = pl.BlockSpec((tb, Lp), lambda b: (b, 0))

            return pl.pallas_call(
                _make_cls_kernel(with_labels, L),
                out_shape=out_shape,
                grid=(n_b,),
                in_specs=in_specs,
                out_specs=out_specs,
                compiler_params=pltpu.CompilerParams(
                    dimension_semantics=("parallel",),
                    vmem_limit_bytes=vmem_limit),
                cost_estimate=cost,
            )(*args)

        try:
            outs = _launch(True)
        except Exception:
            outs = _launch(False)

    if with_labels:
        logits_p, nll_p = outs
        logits = logits_p[:B, :L]
        nll = nll_p[:B, 0]
        # nn.CrossEntropyLoss default: mean over non-ignored rows.
        valid = labels >= 0
        count = jnp.maximum(jnp.sum(valid.astype(jnp.float32)), 1.0)
        loss = jnp.sum(jnp.where(valid, nll, 0.0)) / count
        return dict(loss=loss, logits=logits)
    return dict(loss=None, logits=outs[:B, :L])


# ---------------------------------------------------------------------------
# Plain-JAX reference mirroring the PyTorch forward, for verification
# ---------------------------------------------------------------------------

def _reference_forward(hidden_states, weight, bias, labels, aggregation):
    if aggregation == "max_pooling":
        pooled = jnp.max(hidden_states, axis=1)
    else:
        pooled = hidden_states[:, 0, :]
    logits = (pooled.astype(jnp.float32) @ weight.astype(jnp.float32)
              + bias.astype(jnp.float32))
    loss = None
    if labels is not None:
        valid = labels >= 0
        lse = jax.nn.logsumexp(logits, axis=-1)
        safe = jnp.where(valid, labels, 0)
        picked = jnp.take_along_axis(logits, safe[:, None], axis=-1)[:, 0]
        per = lse - picked
        loss = jnp.sum(jnp.where(valid, per, 0.0)) / jnp.maximum(
            jnp.sum(valid.astype(jnp.float32)), 1.0)
    return logits, loss


if __name__ == "__main__":
    # "config": hidden_size=128, head_scale=1, num_labels=7
    # S and L are deliberately non-aligned to exercise the upstream padding.
    B, S, H, L = 16, 37, 128, 7
    key = jax.random.PRNGKey(0)
    k_hs, k_w, k_b, k_lab = jax.random.split(key, 4)

    # Synthetic backbone output (stand-in for outputs.last_hidden_state).
    hidden_states = jax.random.normal(k_hs, (B, S, H), dtype=jnp.float32)

    # Deterministic classifier parameters (nn.Linear(H * head_scale, L)).
    weight = 0.02 * jax.random.normal(k_w, (H, L), dtype=jnp.float32)
    bias = 0.02 * jax.random.normal(k_b, (L,), dtype=jnp.float32)

    labels = jax.random.randint(k_lab, (B,), 0, L, dtype=jnp.int32)
    labels = labels.at[3].set(-1)   # one ignored row (ignore_index behaviour)

    # Small explicit tiles exercise the streamed (batch x seq) pipeline plus
    # sequence padding; also checks the 2-block batch axis (v7x megacore).
    out_max = model_for_token_classification_forward(
        hidden_states, weight, bias, labels=labels,
        aggregation="max_pooling", batch_tile=8, seq_tile=8)
    # Auto (generation-aware) tiling, no labels.
    out_max_auto = model_for_token_classification_forward(
        hidden_states, weight, bias, labels=None, aggregation="max_pooling")
    # CLS path with fused CE (single grid point).
    out_cls = model_for_token_classification_forward(
        hidden_states, weight, bias, labels=labels, aggregation="cls")

    jax.block_until_ready(out_max["logits"])
    jax.block_until_ready(out_max["loss"])
    jax.block_until_ready(out_max_auto["logits"])
    jax.block_until_ready(out_cls["logits"])
    jax.block_until_ready(out_cls["loss"])

    ref_logits, ref_loss = _reference_forward(
        hidden_states, weight, bias, labels, "max_pooling")
    assert jnp.allclose(out_max["logits"], ref_logits, atol=1e-5, rtol=1e-5)
    assert jnp.allclose(out_max["loss"], ref_loss, atol=1e-5, rtol=1e-5)
    assert out_max_auto["loss"] is None
    assert jnp.allclose(out_max_auto["logits"], ref_logits, atol=1e-5, rtol=1e-5)

    ref_logits_cls, ref_loss_cls = _reference_forward(
        hidden_states, weight, bias, labels, "cls")
    assert jnp.allclose(out_cls["logits"], ref_logits_cls, atol=1e-5, rtol=1e-5)
    assert jnp.allclose(out_cls["loss"], ref_loss_cls, atol=1e-5, rtol=1e-5)

    print("KERNEL_OK")
</pallas_src>

<mosaic_0001>
module attributes {stable_mosaic.version = 11 : i64} {
  func.func @kernel(%arg0: i32, %arg1: i32, %arg2: memref<8x8x128xf32, #tpu.memory_space<vmem>>, %arg3: memref<128x128xf32, #tpu.memory_space<vmem>>, %arg4: memref<1x128xf32, #tpu.memory_space<vmem>>, %arg5: memref<8x1xi32, #tpu.memory_space<vmem>>, %arg6: memref<8x128xf32, #tpu.memory_space<vmem>>, %arg7: memref<8x1xf32, #tpu.memory_space<vmem>>, %arg8: memref<8x128xf32, #tpu.memory_space<vmem>>) attributes {dimension_semantics = [#tpu.dimension_semantics<parallel>, #tpu.dimension_semantics<arbitrary>], iteration_bounds = array<i64: 2, 5>, scalar_prefetch = 0 : i64, scratch_operands = 1 : i64, tpu.core_type = #tpu.core_type<tc>, window_params = [{transform_indices = @transform_0, window_bounds = array<i64: 8, 8, 128>}, {pipeline_mode = #tpu.pipeline_mode<synchronous>, transform_indices = @transform_1, window_bounds = array<i64: 128, 128>}, {pipeline_mode = #tpu.pipeline_mode<synchronous>, transform_indices = @transform_2, window_bounds = array<i64: 1, 128>}, {transform_indices = @transform_3, window_bounds = array<i64: 8, 1>}, {transform_indices = @transform_4, window_bounds = array<i64: 8, 128>}, {transform_indices = @transform_5, window_bounds = array<i64: 8, 1>}]} {
    %c0_i32 = arith.constant 0 : i32
    %0 = arith.cmpi eq, %arg1, %c0_i32 : i32
    %1 = arith.extui %0 : i1 to i32
    %c0_i32_0 = arith.constant 0 : i32
    %2 = arith.cmpi ne, %1, %c0_i32_0 : i32
    scf.if %2 {
      %cst_8 = arith.constant 0xFF800000 : f32
      %11 = vector.broadcast %cst_8 : f32 to vector<8x128xf32>
      %c0_9 = arith.constant 0 : index
      %c0_10 = arith.constant 0 : index
      %12 = vector.load %arg8[%c0_9, %c0_10] : memref<8x128xf32, #tpu.memory_space<vmem>>, vector<8x128xf32>
      tpu.vector_store %arg8[%c0_9, %c0_10], %11 {strides = array<i32>} : memref<8x128xf32, #tpu.memory_space<vmem>>, vector<8x128xf32>,
    } else {
    }
    %c0 = arith.constant 0 : index
    %c0_1 = arith.constant 0 : index
    %3 = vector.load %arg8[%c0, %c0_1] : memref<8x128xf32, #tpu.memory_space<vmem>>, vector<8x128xf32>
    %c0_2 = arith.constant 0 : index
    %c0_3 = arith.constant 0 : index
    %c0_4 = arith.constant 0 : index
    %4 = vector.load %arg2[%c0_2, %c0_3, %c0_4] : memref<8x8x128xf32, #tpu.memory_space<vmem>>, vector<8x8x128xf32>
    %cst = arith.constant dense<0xFF800000> : vector<8x128xf32>
    %5 = vector.multi_reduction <maximumf>, %4, %cst [1] : vector<8x8x128xf32> to vector<8x128xf32>
    %6 = arith.maximumf %3, %5 : vector<8x128xf32>
    %c0_5 = arith.constant 0 : index
    %c0_6 = arith.constant 0 : index
    %7 = vector.load %arg8[%c0_5, %c0_6] : memref<8x128xf32, #tpu.memory_space<vmem>>, vector<8x128xf32>
    tpu.vector_store %arg8[%c0_5, %c0_6], %6 {strides = array<i32>} : memref<8x128xf32, #tpu.memory_space<vmem>>, vector<8x128xf32>,
    %c4_i32 = arith.constant 4 : i32
    %8 = arith.cmpi eq, %arg1, %c4_i32 : i32
    %9 = arith.extui %8 : i1 to i32
    %c0_i32_7 = arith.constant 0 : i32
    %10 = arith.cmpi ne, %9, %c0_i32_7 : i32
    scf.if %10 {
      %c0_8 = arith.constant 0 : index
      %c0_9 = arith.constant 0 : index
      %11 = vector.load %arg8[%c0_8, %c0_9] : memref<8x128xf32, #tpu.memory_space<vmem>>, vector<8x128xf32>
      %c0_10 = arith.constant 0 : index
      %c0_11 = arith.constant 0 : index
      %12 = vector.load %arg3[%c0_10, %c0_11] : memref<128x128xf32, #tpu.memory_space<vmem>>, vector<128x128xf32>
      %cst_12 = arith.constant dense<0.000000e+00> : vector<8x128xf32>
      %13 = tpu.matmul %11, %12, %cst_12 {dimension_numbers = #tpu.dot_dimension_numbers<[1], [0], [0], [1], [0, 0, 1, 1], [], []>} : vector<8x128xf32>, vector<128x128xf32>, vector<8x128xf32> -> vector<8x128xf32>
      %c0_13 = arith.constant 0 : index
      %c0_14 = arith.constant 0 : index
      %14 = vector.load %arg4[%c0_13, %c0_14] : memref<1x128xf32, #tpu.memory_space<vmem>>, vector<1x128xf32>
      %15 = vector.broadcast %14 : vector<1x128xf32> to vector<8x128xf32>
      %16 = arith.addf %13, %15 : vector<8x128xf32>
      %c0_15 = arith.constant 0 : index
      %c0_16 = arith.constant 0 : index
      %17 = vector.load %arg6[%c0_15, %c0_16] : memref<8x128xf32, #tpu.memory_space<vmem>>, vector<8x128xf32>
      tpu.vector_store %arg6[%c0_15, %c0_16], %16 {strides = array<i32>} : memref<8x128xf32, #tpu.memory_space<vmem>>, vector<8x128xf32>,
      %18 = tpu.iota {dimensions = array<i32: 1>} : vector<8x128xi32>
      %c7_i32 = arith.constant 7 : i32
      %19 = vector.broadcast %c7_i32 : i32 to vector<8x128xi32>
      %20 = arith.cmpi slt, %18, %19 : vector<8x128xi32>
      %cst_17 = arith.constant -1.000000e+30 : f32
      %21 = vector.broadcast %cst_17 : f32 to vector<8x128xf32>
      %22 = arith.select %20, %16, %21 : vector<8x128xi1>, vector<8x128xf32>
      %c0_18 = arith.constant 0 : index
      %c0_19 = arith.constant 0 : index
      %23 = vector.load %arg5[%c0_18, %c0_19] : memref<8x1xi32, #tpu.memory_space<vmem>>, vector<8x1xi32>
      %cst_20 = arith.constant dense<0xFF800000> : vector<8xf32>
      %24 = vector.multi_reduction <maximumf>, %22, %cst_20 [1] : vector<8x128xf32> to vector<8xf32>
      %25 = vector.shape_cast %24 : vector<8xf32> to vector<8x1xf32>
      %26 = vector.broadcast %25 : vector<8x1xf32> to vector<8x128xf32>
      %27 = arith.subf %22, %26 : vector<8x128xf32>
      %28 = math.exp %27 : vector<8x128xf32>
      %cst_21 = arith.constant dense<0.000000e+00> : vector<8xf32>
      %29 = vector.multi_reduction <add>, %28, %cst_21 [1] : vector<8x128xf32> to vector<8xf32>
      %30 = vector.shape_cast %29 : vector<8xf32> to vector<8x1xf32>
      %31 = math.log %30 : vector<8x1xf32>
      %32 = arith.addf %25, %31 : vector<8x1xf32>
      %33 = vector.broadcast %23 : vector<8x1xi32> to vector<8x128xi32>
      %34 = arith.cmpi eq, %18, %33 : vector<8x128xi32>
      %cst_22 = arith.constant 0.000000e+00 : f32
      %35 = vector.broadcast %cst_22 : f32 to vector<8x128xf32>
      %36 = arith.select %34, %22, %35 : vector<8x128xi1>, vector<8x128xf32>
      %cst_23 = arith.constant dense<0.000000e+00> : vector<8xf32>
      %37 = vector.multi_reduction <add>, %36, %cst_23 [1] : vector<8x128xf32> to vector<8xf32>
      %38 = vector.shape_cast %37 : vector<8xf32> to vector<8x1xf32>
      %39 = arith.subf %32, %38 : vector<8x1xf32>
      %c0_24 = arith.constant 0 : index
      %c0_25 = arith.constant 0 : index
      %40 = vector.load %arg7[%c0_24, %c0_25] : memref<8x1xf32, #tpu.memory_space<vmem>>, vector<8x1xf32>
      tpu.vector_store %arg7[%c0_24, %c0_25], %39 {strides = array<i32>} : memref<8x1xf32, #tpu.memory_space<vmem>>, vector<8x1xf32>,
    } else {
    }
    return
  }
  func.func @transform_0(%arg0: i32, %arg1: i32) -> (i32, i32, i32) {
    %c0_i32 = arith.constant 0 : i32
    %c0_i32_0 = arith.constant 0 : i32
    return %arg0, %arg1, %c0_i32 : i32, i32, i32
  }
  func.func @transform_1(%arg0: i32, %arg1: i32) -> (i32, i32) {
    %c0_i32 = arith.constant 0 : i32
    %c0_i32_0 = arith.constant 0 : i32
    %c0_i32_1 = arith.constant 0 : i32
    return %c0_i32, %c0_i32_0 : i32, i32
  }
  func.func @transform_2(%arg0: i32, %arg1: i32) -> (i32, i32) {
    %c0_i32 = arith.constant 0 : i32
    %c0_i32_0 = arith.constant 0 : i32
    %c0_i32_1 = arith.constant 0 : i32
    return %c0_i32, %c0_i32_0 : i32, i32
  }
  func.func @transform_3(%arg0: i32, %arg1: i32) -> (i32, i32) {
    %c0_i32 = arith.constant 0 : i32
    %c0_i32_0 = arith.constant 0 : i32
    return %arg0, %c0_i32 : i32, i32
  }
  func.func @transform_4(%arg0: i32, %arg1: i32) -> (i32, i32) {
    %c0_i32 = arith.constant 0 : i32
    %c0_i32_0 = arith.constant 0 : i32
    return %arg0, %c0_i32 : i32, i32
  }
  func.func @transform_5(%arg0: i32, %arg1: i32) -> (i32, i32) {
    %c0_i32 = arith.constant 0 : i32
    %c0_i32_0 = arith.constant 0 : i32
    return %arg0, %c0_i32 : i32, i32
  }
}

module attributes {stable_mosaic.version = 11 : i64} {
  func.func @kernel(%arg0: i32, %arg1: i32, %arg2: memref<8x8x128xf32, #tpu.memory_space<vmem>>, %arg3: memref<128x128xf32, #tpu.memory_space<vmem>>, %arg4: memref<1x128xf32, #tpu.memory_space<vmem>>, %arg5: memref<8x1xi32, #tpu.memory_space<vmem>>, %arg6: memref<8x128xf32, #tpu.memory_space<vmem>>, %arg7: memref<8x1xf32, #tpu.memory_space<vmem>>, %arg8: memref<8x128xf32, #tpu.memory_space<vmem>>) attributes {dimension_semantics = [#tpu.dimension_semantics<parallel>, #tpu.dimension_semantics<arbitrary>], iteration_bounds = array<i64: 2, 5>, scalar_prefetch = 0 : i64, scratch_operands = 1 : i64, tpu.core_type = #tpu.core_type<tc>, window_params = [{transform_indices = @transform_0, window_bounds = array<i64: 8, 8, 128>}, {pipeline_mode = #tpu.pipeline_mode<synchronous>, transform_indices = @transform_1, window_bounds = array<i64: 128, 128>}, {pipeline_mode = #tpu.pipeline_mode<synchronous>, transform_indices = @transform_2, window_bounds = array<i64: 1, 128>}, {transform_indices = @transform_3, window_bounds = array<i64: 8, 1>}, {transform_indices = @transform_4, window_bounds = array<i64: 8, 128>}, {transform_indices = @transform_5, window_bounds = array<i64: 8, 1>}]} {
    %c0_i32 = arith.constant 0 : i32
    %0 = arith.cmpi eq, %arg1, %c0_i32 : i32
    %1 = arith.extui %0 : i1 to i32
    %c0_i32_0 = arith.constant 0 : i32
    %2 = arith.cmpi ne, %1, %c0_i32_0 : i32
    scf.if %2 {
      %cst_8 = arith.constant 0xFF800000 : f32
      %11 = vector.broadcast %cst_8 : f32 to vector<8x128xf32>
      %c0_9 = arith.constant 0 : index
      %c0_10 = arith.constant 0 : index
      %12 = vector.load %arg8[%c0_9, %c0_10] : memref<8x128xf32, #tpu.memory_space<vmem>>, vector<8x128xf32>
      tpu.vector_store %arg8[%c0_9, %c0_10], %11 {strides = array<i32>} : memref<8x128xf32, #tpu.memory_space<vmem>>, vector<8x128xf32>,
    } else {
    }
    %c0 = arith.constant 0 : index
    %c0_1 = arith.constant 0 : index
    %3 = vector.load %arg8[%c0, %c0_1] : memref<8x128xf32, #tpu.memory_space<vmem>>, vector<8x128xf32>
    %c0_2 = arith.constant 0 : index
    %c0_3 = arith.constant 0 : index
    %c0_4 = arith.constant 0 : index
    %4 = vector.load %arg2[%c0_2, %c0_3, %c0_4] : memref<8x8x128xf32, #tpu.memory_space<vmem>>, vector<8x8x128xf32>
    %cst = arith.constant dense<0xFF800000> : vector<8x128xf32>
    %5 = vector.multi_reduction <maximumf>, %4, %cst [1] : vector<8x8x128xf32> to vector<8x128xf32>
    %6 = arith.maximumf %3, %5 : vector<8x128xf32>
    %c0_5 = arith.constant 0 : index
    %c0_6 = arith.constant 0 : index
    %7 = vector.load %arg8[%c0_5, %c0_6] : memref<8x128xf32, #tpu.memory_space<vmem>>, vector<8x128xf32>
    tpu.vector_store %arg8[%c0_5, %c0_6], %6 {strides = array<i32>} : memref<8x128xf32, #tpu.memory_space<vmem>>, vector<8x128xf32>,
    %c4_i32 = arith.constant 4 : i32
    %8 = arith.cmpi eq, %arg1, %c4_i32 : i32
    %9 = arith.extui %8 : i1 to i32
    %c0_i32_7 = arith.constant 0 : i32
    %10 = arith.cmpi ne, %9, %c0_i32_7 : i32
    scf.if %10 {
      %c0_8 = arith.constant 0 : index
      %c0_9 = arith.constant 0 : index
      %11 = vector.load %arg8[%c0_8, %c0_9] : memref<8x128xf32, #tpu.memory_space<vmem>>, vector<8x128xf32>
      %c0_10 = arith.constant 0 : index
      %c0_11 = arith.constant 0 : index
      %12 = vector.load %arg3[%c0_10, %c0_11] : memref<128x128xf32, #tpu.memory_space<vmem>>, vector<128x128xf32>
      %cst_12 = arith.constant dense<0.000000e+00> : vector<8x128xf32>
      %13 = tpu.matmul %11, %12, %cst_12 {dimension_numbers = #tpu.dot_dimension_numbers<[1], [0], [0], [1], [0, 0, 1, 1], [], []>} : vector<8x128xf32>, vector<128x128xf32>, vector<8x128xf32> -> vector<8x128xf32>
      %c0_13 = arith.constant 0 : index
      %c0_14 = arith.constant 0 : index
      %14 = vector.load %arg4[%c0_13, %c0_14] : memref<1x128xf32, #tpu.memory_space<vmem>>, vector<1x128xf32>
      %15 = vector.broadcast %14 : vector<1x128xf32> to vector<8x128xf32>
      %16 = arith.addf %13, %15 : vector<8x128xf32>
      %c0_15 = arith.constant 0 : index
      %c0_16 = arith.constant 0 : index
      %17 = vector.load %arg6[%c0_15, %c0_16] : memref<8x128xf32, #tpu.memory_space<vmem>>, vector<8x128xf32>
      tpu.vector_store %arg6[%c0_15, %c0_16], %16 {strides = array<i32>} : memref<8x128xf32, #tpu.memory_space<vmem>>, vector<8x128xf32>,
      %18 = tpu.iota {dimensions = array<i32: 1>} : vector<8x128xi32>
      %c7_i32 = arith.constant 7 : i32
      %19 = vector.broadcast %c7_i32 : i32 to vector<8x128xi32>
      %20 = arith.cmpi slt, %18, %19 : vector<8x128xi32>
      %cst_17 = arith.constant -1.000000e+30 : f32
      %21 = vector.broadcast %cst_17 : f32 to vector<8x128xf32>
      %22 = arith.select %20, %16, %21 : vector<8x128xi1>, vector<8x128xf32>
      %c0_18 = arith.constant 0 : index
      %c0_19 = arith.constant 0 : index
      %23 = vector.load %arg5[%c0_18, %c0_19] : memref<8x1xi32, #tpu.memory_space<vmem>>, vector<8x1xi32>
      %cst_20 = arith.constant dense<0xFF800000> : vector<8xf32>
      %24 = vector.multi_reduction <maximumf>, %22, %cst_20 [1] : vector<8x128xf32> to vector<8xf32>
      %25 = vector.shape_cast %24 : vector<8xf32> to vector<8x1xf32>
      %26 = vector.broadcast %25 : vector<8x1xf32> to vector<8x128xf32>
      %27 = arith.subf %22, %26 : vector<8x128xf32>
      %28 = math.exp %27 : vector<8x128xf32>
      %cst_21 = arith.constant dense<0.000000e+00> : vector<8xf32>
      %29 = vector.multi_reduction <add>, %28, %cst_21 [1] : vector<8x128xf32> to vector<8xf32>
      %30 = vector.shape_cast %29 : vector<8xf32> to vector<8x1xf32>
      %31 = math.log %30 : vector<8x1xf32>
      %32 = arith.addf %25, %31 : vector<8x1xf32>
      %33 = vector.broadcast %23 : vector<8x1xi32> to vector<8x128xi32>
      %34 = arith.cmpi eq, %18, %33 : vector<8x128xi32>
      %cst_22 = arith.constant 0.000000e+00 : f32
      %35 = vector.broadcast %cst_22 : f32 to vector<8x128xf32>
      %36 = arith.select %34, %22, %35 : vector<8x128xi1>, vector<8x128xf32>
      %cst_23 = arith.constant dense<0.000000e+00> : vector<8xf32>
      %37 = vector.multi_reduction <add>, %36, %cst_23 [1] : vector<8x128xf32> to vector<8xf32>
      %38 = vector.shape_cast %37 : vector<8xf32> to vector<8x1xf32>
      %39 = arith.subf %32, %38 : vector<8x1xf32>
      %c0_24 = arith.constant 0 : index
      %c0_25 = arith.constant 0 : index
      %40 = vector.load %arg7[%c0_24, %c0_25] : memref<8x1xf32, #tpu.memory_space<vmem>>, vector<8x1xf32>
      tpu.vector_store %arg7[%c0_24, %c0_25], %39 {strides = array<i32>} : memref<8x1xf32, #tpu.memory_space<vmem>>, vector<8x1xf32>,
    } else {
    }
    return
  }
  func.func @transform_0(%arg0: i32, %arg1: i32) -> (i32, i32, i32) {
    %c0_i32 = arith.constant 0 : i32
    %c0_i32_0 = arith.constant 0 : i32
    return %arg0, %arg1, %c0_i32 : i32, i32, i32
  }
  func.func @transform_1(%arg0: i32, %arg1: i32) -> (i32, i32) {
    %c0_i32 = arith.constant 0 : i32
    %c0_i32_0 = arith.constant 0 : i32
    %c0_i32_1 = arith.constant 0 : i32
    return %c0_i32, %c0_i32_0 : i32, i32
  }
  func.func @transform_2(%arg0: i32, %arg1: i32) -> (i32, i32) {
    %c0_i32 = arith.constant 0 : i32
    %c0_i32_0 = arith.constant 0 : i32
    %c0_i32_1 = arith.constant 0 : i32
    return %c0_i32, %c0_i32_0 : i32, i32
  }
  func.func @transform_3(%arg0: i32, %arg1: i32) -> (i32, i32) {
    %c0_i32 = arith.constant 0 : i32
    %c0_i32_0 = arith.constant 0 : i32
    return %arg0, %c0_i32 : i32, i32
  }
  func.func @transform_4(%arg0: i32, %arg1: i32) -> (i32, i32) {
    %c0_i32 = arith.constant 0 : i32
    %c0_i32_0 = arith.constant 0 : i32
    return %arg0, %c0_i32 : i32, i32
  }
  func.func @transform_5(%arg0: i32, %arg1: i32) -> (i32, i32) {
    %c0_i32 = arith.constant 0 : i32
    %c0_i32_0 = arith.constant 0 : i32
    return %arg0, %c0_i32 : i32, i32
  }
}

</mosaic_0001>

<bundles_post_ra>
// kernel: tpu_custom_call.1
= control target key start
LH: loop header
LB: loop body
LE: loop exit
PB: predicated region body
PF: predicated region fallthrough
CT: control target
= control target key end

     0   :  { %s1409_s0 = inlined_call_operand.hbm [shape: f32[16,40,128], index: 0, kind: input, shape index: {}]   ;;  %s1410_s1 = inlined_call_operand.hbm [shape: f32[128,128], index: 1, kind: input, shape index: {}]   ;;  %s1411_s2 = inlined_call_operand.vmem [shape: f32[1,128], index: 2, kind: input, shape index: {}]   ;;  %s1412_s3 = inlined_call_operand.vmem [shape: s32[16,1], index: 3, kind: input, shape index: {}]   ;;  %s1413_s4 = inlined_call_operand.hbm [shape: f32[16,128], index: 4, kind: output, shape index: {0}]   ;;  %s1414_s5 = inlined_call_operand.vmem [shape: f32[16,1], index: 5, kind: output, shape index: {1}]  }
   0x1   :  { %1431 = sst [smem:[#allocation18_spill]] %s1410_s1 }
   0x2   :  { %1432 = sst [smem:[#allocation19_spill]] %s1413_s4 }
   0x3   :  { %11 = vsyncpa [#allocation4], 0 }
   0x4   :  { %13 = vsyncpa [#allocation4 + $0x1], 0 }
   0x5   :  { %14 = vsyncpa [#allocation7], 0 }
   0x6   :  { %15 = vsyncpa [#allocation5], 0 }
   0x7   :  { %17 = vsyncpa [#allocation5 + $0x1], 0  ;;  %s1116_s18 = smov 0   ;;  %s1118_s19 = smov 0  }
   0x8   :  { %s1120_s20 = smov 0   ;;  %s1122_s21 = smov 0  }
   0x9   :  { %s1124_s22 = smov 0   ;;  %s1126_s23 = smov 0  }
   0xa   :  { %s1128_s24 = smov 0   ;;  %s1130_s25 = smov 0  }
   0xb   :  { %s1132_s26 = smov 0   ;;  %s1134_s27 = smov 0  }
   0xc   :  { %s1136_s28 = smov 0  }
   0xd LB: > { %1433 = sst [smem:[#allocation12_spill]] %s1033_s18  ;;  %s664_s29 = sadd.s32 4294967295, %s1073_s28   ;;  %s1073_s28 = sphi %s1136_s28, %s1474_s28   ;;  %s1069_s27 = sphi %s1134_s27, %s1473_s27   ;;  %s1065_s26 = sphi %s1132_s26, %s1472_s26   ;;  %s1061_s25 = sphi %s1130_s25, %s1471_s25   ;;  %s1057_s24 = sphi %s1128_s24, %s1462_s24   ;;  %s1053_s23 = sphi %s1126_s23, %s1470_s23   ;;  %s1049_s22 = sphi %s1124_s22, %s1469_s22   ;;  %s1045_s21 = sphi %s1122_s21, %s1468_s21   ;;  %s1041_s20 = sphi %s1120_s20, %s1467_s20   ;;  %s1037_s19 = sphi %s1118_s19, %s1466_s19   ;;  %s1033_s18 = sphi %s1116_s18, %s1465_s18  }
   0xe   : > { %1434 = sst [smem:[#allocation13_spill]] %s1065_s26  ;;  %s665_s30 = sadd.s32 4294967294, %s1073_s28  }
   0xf   : > { %1435 = sst [smem:[#allocation14_spill]] %s1073_s28  ;;  %p51_p0 = scmp.ne.s32.totalorder %s1053_s23, %s1049_s22 }
  0x10   : > { %p52_p1 = scmp.eq.s32.totalorder %s1073_s28, 0  ;;  %p57_p2 = scmp.ne.s32.totalorder %s1049_s22, %s1045_s21 }
  0x11   : > { %p1176_p3 = scmp.eq.s32.totalorder %s664_s29, 0  ;;  %p148_p5 = scmp.ne.s32.totalorder %s1041_s20, %s1037_s19 }
  0x12   : > { %p1181_p4 = por %p52_p1, %p51_p0  ;;  %p149_p7 = scmp.eq.s32.totalorder %s664_s29, 9 }
  0x13   : > { %s1436_s7 = scalar_select %p1176_p3, 1, 0 }
  0x14   : > { %p1189_p6 = por %p1176_p3, %p57_p2  ;;  %p154_p8 = scmp.ne.s32.totalorder %s1037_s19, %s1033_s18 }
  0x15   : > { %p155_p9 = scmp.eq.s32.totalorder %s665_s30, 9  ;;  %p1195_p10 = por %p149_p7, %p148_p5 }
  0x16   : > { %s1438_s10 = scalar_select %p1189_p6, 1, 0 }
  0x17   : > { %s1439_s11 = scalar_select %p1195_p10, 1, 0 }
  0x18   : > { %p666_p11 = scmp.ge.s32.totalorder %s1073_s28, 1  ;;  %p1200_p12 = por %p155_p9, %p154_p8 }
  0x19   : > { %p188_p13 = scmp.lt.s32.totalorder %s1073_s28, 11  ;;  %s1075_s14 = smov [#allocation6]  }
  0x1a   : > { %s1440_s12 = scalar_select %p1200_p12, 1, 0 }
  0x1b   : > { %p1205_p0 = pnand %p666_p11, %p188_p13  ;;  %s200_s15 = sshll.u32 %s1075_s14, 4  ;;  %s201_s15 = int_to_ptr.vmem [resolvable:$true] %s200_s15 }
  0x1c   : > { %1441 = sst [smem:[#allocation15_spill]] %s1440_s12  ;;  %p784_p2 = scmp.lt.s32.totalorder %s1073_s28, 10 }
  0x1d   : > { %s1442_s13 = scalar_select %p1205_p0, 1, 0 }
  0x1e   : > { %p771_p1 = pneg %p1205_p0  ;;  %p1220_p7 = pnand %p784_p2, %p1181_p4 }
  0x1f   : > { %s1445_s1 = sld [smem:[#allocation18_spill]] }
  0x20   : > { %p1214_p5 = pnand %p771_p1, %p1176_p3 }
  0x21   : > { %s1444_s17 = scalar_select %p1220_p7, 1, 0 }
  0x22   : > { %p891_p9 = pneg %p1214_p5 }
  0x25   : > { %s889_s30 = scalar_lea.hbm %s1445_s1, 2048 }
  0x26   : > { %p890_p8 = scmp.ne.s32.totalorder %s1445_s1, %s889_s30  ;;  %p896_p1 = scmp.lt.u32.totalorder %s889_s30, %s1445_s1 }
  0x28   : > { %p892_p11 = pnand %p891_p9, %p890_p8 }
  0x2a   : > { %p893_p13 = pneg %p892_p11 }
  0x2c   : > { %p898_p4 = pnand %p896_p1, %p893_p13 }
  0x2e   : > { %901 = shalt.err (!%p898_p4)
}
  0x2f   : > { %s902_s9 = scalar_lea.vmem %s201_s15, 2048  ;;  %p910_p3 = scmp.lt.s32.totalorder %s201_s15, %s201_s15 }
  0x30   : > { %p903_p2 = scmp.ne.s32.totalorder %s201_s15, %s902_s9  ;;  %p911_p6 = scmp.lt.s32.totalorder %s902_s9, %s902_s9 }
  0x32   : > { %p905_p12 = pnand %p903_p2, %p891_p9  ;;  %p912_p0 = por %p911_p6, %p910_p3 }
  0x34   : > { %p906_p10 = pneg %p905_p12 }
  0x36   : > { %p913_p7 = pnand %p912_p0, %p906_p10 }
  0x38   : > { %916 = shalt.err (!%p913_p7)
}
  0x39   : > { %s1425_s6 = smov 128   ;;  %s1426_s8 = smov 8  }
  0x3a   : > { %774 = dma.hbm_to_vmem [thread:$0]  (!%p1214_p5), %s1445_s1, 2048, %s201_s15, [#allocation7], %s1425_s6, %s1425_s6, %s1426_s8  }
  0x3b   : > { %s32_s29 = sadd.s32 1, %s1065_s26  ;;  %s35_s30 = sadd.s32 1, %s1069_s27 }
  0x3c   : > { %p33_p3 = scmp.ge.s32.totalorder %s32_s29, 5  ;;  %s217_s14 = sand.u32 1, %s1053_s23  }
  0x3d   : > { %s669_s9 = sshll.u32 %s217_s14, 6  ;;  %s762_s18 = smul.u32 40, %s1069_s27 }
  0x3e   : > { %s1476_s29 = smov (%p33_p3, %s32_s29), 0  ;;  %s1478_s30 = smov (!%p33_p3, %s35_s30), %s1069_s27 }
  0x3f   : > { %1446 = sst [smem:[#allocation16_spill]] %s1476_s29  ;;  %s40_s16 = ssub.s32 %s1065_s26, %s1476_s29 }
  0x40   : > { %p37_p6 = scmp.ge.s32.totalorder %s1478_s30, 2  ;;  %s221_s28 = scalar_lea.vmem [#allocation3], %s669_s9 }
  0x41   : > { %s230_s15 = sshll.u32 %s221_s28, 4  ;;  %s227_s12 = sadd.s32 %s1065_s26, %s762_s18  ;;  %s1255_s15 = int_to_ptr.vmem [resolvable:$true] %s230_s15 }
  0x42   : > { %s1480_s30 = smov (%p37_p6, %s1478_s30), 0  ;;  %s672_s6 = sshll.u32 %s227_s12, 7 }
  0x43   : > { %1447 = sst [smem:[#allocation17_spill]] %s1480_s30  ;;  %s39_s21 = ssub.s32 %s1069_s27, %s1480_s30 }
  0x44   : > { %s41_s8 = sor.u32 %s40_s16, %s39_s21  ;;  %p136_p10 = scmp.eq.s32.totalorder %s39_s21, 0 }
  0x45   : > { %p42_p12 = scmp.eq.s32.totalorder %s41_s8, 0  ;;  %s1262_s29 = scalar_lea.hbm %s1409_s0, %s672_s6 }
  0x46   : > { %s1448_s9 = sadd.s32 1, %s1041_s20  ;;  %s1449_s18 = sadd.s32 1, %s1053_s23 }
  0x47   : > { %s1267_s28 = scalar_select %p136_p10, %s1041_s20, %s1448_s9  }
  0x48   : > { %s1272_s26 = scalar_select %p42_p12, %s1053_s23, %s1449_s18  }
  0x49   : > { %s1274_s30 = scalar_lea.sflag [#allocation4], %s217_s14  ;;  %s917_s16 = scalar_lea.hbm %s1262_s29, 1024 }
  0x4a   : > { %p918_p0 = scmp.ne.s32.totalorder %s1262_s29, %s917_s16  ;;  %p1450_p5 = scmp.ne.s32.totalorder %s1444_s17, 0 }
  0x4b   : > { %s922_s6 = scalar_lea.hbm %s1409_s0, 10240  ;;  %p923_p11 = scmp.lt.u32.totalorder %s1262_s29, %s1409_s0 }
  0x4c   : > { %p919_p7 = pneg %p1450_p5  ;;  %p924_p13 = scmp.lt.u32.totalorder %s922_s6, %s917_s16 }
  0x4d   : > { %p926_p4 = scmp.lt.u32.totalorder %s917_s16, %s1262_s29 }
  0x4e   : > { %p920_p8 = pnand %p919_p7, %p918_p0  ;;  %p925_p1 = por %p924_p13, %p923_p11 }
  0x50   : > { %p921_p9 = pneg %p920_p8  ;;  %p927_p2 = por %p926_p4, %p925_p1 }
  0x52   : > { %p928_p3 = pnand %p927_p2, %p921_p9 }
  0x54   : > { %931 = shalt.err (!%p928_p3)
}
  0x55   : > { %s932_s14 = scalar_lea.vmem %s1255_s15, 1024  ;;  %s1078_s21 = smov [#allocation3]  }
  0x56   : > { %p933_p6 = scmp.ne.s32.totalorder %s1255_s15, %s932_s14  ;;  %s937_s9 = sshll.u32 %s1078_s21, 4  ;;  %s938_s9 = int_to_ptr.vmem [resolvable:$false] %s937_s9 }
  0x57   : > { %s939_s18 = scalar_lea.vmem %s938_s9, 2048  ;;  %p940_p0 = scmp.lt.s32.totalorder %s1255_s15, %s938_s9 }
  0x58   : > { %p935_p10 = pnand %p933_p6, %p919_p7  ;;  %p941_p8 = scmp.lt.s32.totalorder %s939_s18, %s932_s14 }
  0x5a   : > { %p936_p12 = pneg %p935_p10  ;;  %p942_p11 = por %p941_p8, %p940_p0 }
  0x5c   : > { %p943_p13 = pnand %p942_p11, %p936_p12 }
  0x5e   : > { %946 = shalt.err (!%p943_p13)
}
  0x5f   : > { %s1079_s16 = smov 640   ;;  %s1451_s1 = smov 8  }
  0x60   : > { %s1452_s4 = smov 128   ;;  %p1453_p7 = scmp.ne.s32.totalorder %s1442_s13, 0 }
  0x61   : > { %778 = dma.hbm_to_vmem [thread:$0]  (!%p1450_p5), %s1262_s29, 1024, %s1255_s15, %s1274_s30, %s1079_s16, %s1452_s4, %s1451_s1  }
  0x62   : > { %249 = sbr.rel (%p1453_p7) target bundleno = 725 (0x2d5), region = 36  ;;  %s251_s6 = sand.u32 (!%p1453_p7), 1, %s1049_s22  }
  0x63   : > { %s674_s8 = sshll.u32 (!%p1453_p7), %s251_s6, 6  ;;  %s252_s12 = scalar_lea.sflag (!%p1453_p7), [#allocation4], %s251_s6 }
  0x64   : > { %s255_s14 = scalar_lea.vmem (!%p1453_p7), [#allocation3], %s674_s8  ;;  %p1454_p9 = scmp.ne.s32.totalorder (!%p1453_p7), %s1438_s10, 0 }
  0x69   : > { %1020 = dma.done.wait (%p1454_p9), %s252_s12, 1024  }
  0x6a   : > { %1022 = vsyncadd (%p1454_p9), %s252_s12, 4294966272  ;;  %p1455_p1 = scmp.ne.s32.totalorder %s1436_s7, 0 }
  0x6c   : > { %1024 = dma.done.wait (%p1455_p1), [#allocation7], 2048  }
  0x6d   : > { %1026 = vsyncadd (%p1455_p1), [#allocation7], 4294965248  ;;  %s285_s13 = sand.u32 1, %s1037_s19   ;;  %p295_p5 = scmp.lt.s32.totalorder %s1061_s25, 1 }
  0x6e   : > { %s1319_s17 = sshll.u32 %s285_s13, 3  ;;  %p679_p4 = scmp.ne.s32.totalorder %s1057_s24, 0 }
  0x6f   : > { %s296_s29 = scalar_select %p295_p5, %s1061_s25, 1 }
  0x70   : > { %s287_s16 = scalar_lea.vmem [#allocation8], %s1319_s17  ;;  %306 = sbr.rel (%p679_p4) target bundleno = 119 (0x77), region = 48  ;;  %v1080_v0 = vmov (!%p679_p4), -inf  }
  0x71   : > { %s677_s30 = sshll.u32 %s296_s29, 3  ;;  %307 = vst [vmem:[#allocation2] sm:$0xff] (!%p679_p4), %v1080_v0 }
  0x72   : > { %s1325_s21 = scalar_lea.vmem %s1412_s3, %s677_s30  ;;  %s1330_s18 = scalar_lea.vmem %s1414_s5, %s677_s30 }
  0x77 PF: > { %v309_v1 = vld [vmem:[%s255_s14] sm:$0xff]  ;;  %v310_v2 = vld [vmem:[%s255_s14 + $0x8] sm:$0xff]  ;;  %v311_v3 = vld [vmem:[%s255_s14 + $0x10] sm:$0xff]  ;;  %vm373_vm0 = vcmask 1041409   ;;  %vm375_vm1 = vcmask 1042434   ;;  %vm377_vm2 = vcmask 1043459  }
  0x78   : > { %v312_v4 = vld [vmem:[%s255_s14 + $0x18] sm:$0xff]  ;;  %v313_v5 = vld [vmem:[%s255_s14 + $0x20] sm:$0xff]  ;;  %v317_v6 = vrot.slane %v309_v1, 4  ;;  %v323_v7 = vrot.slane %v310_v2, 4  ;;  %v314_v8 = vld [vmem:[%s255_s14 + $0x28] sm:$0xff]  ;;  %v329_v11 = vrot.slane %v311_v3, 4 }
  0x79   : > { %v315_v9 = vld [vmem:[%s255_s14 + $0x30] sm:$0xff]  ;;  %v316_v10 = vld [vmem:[%s255_s14 + $0x38] sm:$0xff]  ;;  %v335_v12 = vrot.slane %v312_v4, 4  ;;  %v341_v13 = vrot.slane %v313_v5, 4  ;;  %v347_v16 = vrot.slane %v314_v8, 4  ;;  %vm379_vm3 = vcmask 1044484  }
  0x7a   : > { %v318_v14 = vmax.f32 %v309_v1, %v317_v6  ;;  %v324_v15 = vmax.f32 %v310_v2, %v323_v7  ;;  %v353_v17 = vrot.slane %v315_v9, 4  ;;  %v330_v18 = vmax.f32 %v311_v3, %v329_v11  ;;  %v308_v61 = vld [vmem:[#allocation2] sm:$0xff]  ;;  %p680_p2 = scmp.ne.s32.totalorder %s1057_s24, 4 }
  0x7b   : > { %v336_v19 = vmax.f32 %v312_v4, %v335_v12  ;;  %v342_v20 = vmax.f32 %v313_v5, %v341_v13  ;;  %v359_v21 = vrot.slane %v316_v10, 4  ;;  %v348_v24 = vmax.f32 %v314_v8, %v347_v16  ;;  %v395_v2 = vld [vmem:[#allocation6] sm:$0xff] (!%p680_p2)  ;;  %v396_v3 = vld [vmem:[#allocation6 + $0x8] sm:$0xff] (!%p680_p2)  ;;  %v397_v4 = vld [vmem:[#allocation6 + $0x10] sm:$0xff] (!%p680_p2) }
  0x7c   : > { %v319_v22 = vrot.slane %v318_v14, 2  ;;  %v325_v23 = vrot.slane %v324_v15, 2  ;;  %v354_v25 = vmax.f32 %v315_v9, %v353_v17  ;;  %v331_v26 = vrot.slane %v330_v18, 2  ;;  %v398_v7 = vld [vmem:[#allocation6 + $0x18] sm:$0xff] (!%p680_p2)  ;;  %v400_v11 = vld [vmem:[#allocation6 + $0x28] sm:$0xff] (!%p680_p2)  ;;  %v401_v13 = vld [vmem:[#allocation6 + $0x30] sm:$0xff] (!%p680_p2) }
  0x7d   : > { %v337_v27 = vrot.slane %v336_v19, 2  ;;  %v343_v28 = vrot.slane %v342_v20, 2  ;;  %v360_v29 = vmax.f32 %v316_v10, %v359_v21  ;;  %v349_v32 = vrot.slane %v348_v24, 2  ;;  %v399_v10 = vld [vmem:[#allocation6 + $0x20] sm:$0xff] (!%p680_p2)  ;;  %v404_v17 = vld [vmem:[#allocation6 + $0x48] sm:$0xff] (!%p680_p2) }
  0x7e   : > { %v320_v30 = vmax.f32 %v318_v14, %v319_v22  ;;  %v326_v31 = vmax.f32 %v324_v15, %v325_v23  ;;  %v355_v33 = vrot.slane %v354_v25, 2  ;;  %v332_v34 = vmax.f32 %v330_v18, %v331_v26  ;;  %v402_v14 = vld [vmem:[#allocation6 + $0x38] sm:$0xff] (!%p680_p2)  ;;  %v403_v16 = vld [vmem:[#allocation6 + $0x40] sm:$0xff] (!%p680_p2)  ;;  %v408_v23 = vld [vmem:[#allocation6 + $0x68] sm:$0xff] (!%p680_p2) }
  0x7f   : > { %v338_v35 = vmax.f32 %v336_v19, %v337_v27  ;;  %v344_v36 = vmax.f32 %v342_v20, %v343_v28  ;;  %v361_v37 = vrot.slane %v360_v29, 2  ;;  %v350_v40 = vmax.f32 %v348_v24, %v349_v32  ;;  %v405_v19 = vld [vmem:[#allocation6 + $0x50] sm:$0xff] (!%p680_p2)  ;;  %v406_v20 = vld [vmem:[#allocation6 + $0x58] sm:$0xff] (!%p680_p2)  ;;  %v407_v22 = vld [vmem:[#allocation6 + $0x60] sm:$0xff] (!%p680_p2) }
  0x80   : > { %v321_v38 = vrot.slane %v320_v30, 1  ;;  %v327_v39 = vrot.slane %v326_v31, 1  ;;  %v356_v41 = vmax.f32 %v354_v25, %v355_v33  ;;  %v333_v42 = vrot.slane %v332_v34, 1  ;;  %v409_v25 = vld [vmem:[#allocation6 + $0x70] sm:$0xff] (!%p680_p2)  ;;  %v410_v26 = vld [vmem:[#allocation6 + $0x78] sm:$0xff] (!%p680_p2) }
  0x81   : > { %v339_v43 = vrot.slane %v338_v35, 1  ;;  %v345_v44 = vrot.slane %v344_v36, 1  ;;  %v362_v45 = vmax.f32 %v360_v29, %v361_v37  ;;  %v351_v48 = vrot.slane %v350_v40, 1  ;;  %v681_v32 = vld [vmem:[%s1411_s2] ss:$0 sm:$0xff] (!%p680_p2) }
  0x82   : > { %v322_v46 = vmax.f32 %v320_v30, %v321_v38  ;;  %v328_v47 = vmax.f32 %v326_v31, %v327_v39  ;;  %v357_v49 = vrot.slane %v356_v41, 1  ;;  %v334_v50 = vmax.f32 %v332_v34, %v333_v42  ;;  %v493_v37 = vld [vmem:[%s1325_s21] sm:$0xff] (!%p680_p2) }
  0x83   : > { %v340_v51 = vmax.f32 %v338_v35, %v339_v43  ;;  %v346_v52 = vmax.f32 %v344_v36, %v345_v44  ;;  %v363_v53 = vrot.slane %v362_v45, 1  ;;  %v352_v54 = vmax.f32 %v350_v40, %v351_v48 }
  0x84   : > { %v374_v55 = vsel %vm373_vm0, %v328_v47, %v322_v46  ;;  %v358_v56 = vmax.f32 %v356_v41, %v357_v49  ;;  %vm381_vm4 = vcmask 1045509   ;;  %vm383_vm5 = vcmask 1046534  }
  0x85   : > { %v376_v57 = vsel %vm375_vm1, %v334_v50, %v374_v55  ;;  %v364_v58 = vmax.f32 %v362_v45, %v363_v53  ;;  %vm385_vm6 = vcmask 1047559   ;;  %v1081_v5 = vmov (!%p680_p2), 0.0|0.0  }
  0x86   : > { %v378_v59 = vsel %vm377_vm2, %v340_v51, %v376_v57  ;;  %738 = vmatprep.subr.bf16.mxu0 (!%p680_p2), %v1081_v5  ;;  %v739_v6 = vpack.c.bf16 (!%p680_p2), %v396_v3, %v395_v2  ;;  %vm1082_vm7 = vmmov (!%p680_p2), 0   ;;  %v1083_v8 = vmov (!%p680_p2), 0.0  }
  0x87   : > { %v380_v60 = vsel %vm379_vm3, %v346_v52, %v378_v59  ;;  %393 = sbr.rel (%p680_p2) target bundleno = 699 (0x2bb), region = 52  ;;  %735 = vmatprep.mubr.msk.f32.mxu0 (!%p680_p2), %vm1082_vm7, %v1083_v8  ;;  %v742_v9 = vpack.c.bf16 (!%p680_p2), %v398_v7, %v397_v4  ;;  %v745_v12 = vpack.c.bf16 (!%p680_p2), %v400_v11, %v399_v10  ;;  %v748_v15 = vpack.c.bf16 (!%p680_p2), %v402_v14, %v401_v13 }
  0x88   : > { %v382_v62 = vsel %vm381_vm4, %v352_v54, %v380_v60  ;;  %740 = vmatpush3.bf16.msra.mxu0 (!%p680_p2), %v739_v6  ;;  %v751_v18 = vpack.c.bf16 (!%p680_p2), %v404_v17, %v403_v16  ;;  %v754_v21 = vpack.c.bf16 (!%p680_p2), %v406_v20, %v405_v19  ;;  %v757_v24 = vpack.c.bf16 (!%p680_p2), %v408_v23, %v407_v22 }
  0x89   : > { %v384_v63 = vsel %vm383_vm5, %v358_v56, %v382_v62  ;;  %741 = vmatprep.subr.bf16.mxu0 (!%p680_p2), %v1081_v5  ;;  %v760_v27 = vpack.c.bf16 (!%p680_p2), %v410_v26, %v409_v25  ;;  %v1084_v29 = vmov (!%p680_p2), 0   ;;  %v489_v30 = vlaneseq (!%p680_p2) }
  0x8a   : > { %v386_v0 = vsel %vm385_vm6, %v364_v58, %v384_v63  ;;  %884 = vset.pattern.permute.xlu0 (!%p680_p2), %v1084_v29  ;;  %vm512_vm10 = vcmask (!%p680_p2), 7168  }
  0x8b   : > { %v388_v1 = vmax.f32 %v308_v61, %v386_v0  ;;  %v490_v31 = vand.u32 (!%p680_p2), 127, %v489_v30 }
  0x8c   : > { %743 = vmatpush3.bf16.msra.mxu0 (!%p680_p2), %v742_v9 }
  0x8d   : > { %389 = vst [vmem:[#allocation2] sm:$0xff] %v388_v1  ;;  %744 = vmatprep.subr.bf16.mxu0 (!%p680_p2), %v1081_v5  ;;  %vm491_vm8 = vcmp.lt.s32.totalorder (!%p680_p2), %v490_v31, 7 }
  0x90   : > { %746 = vmatpush3.bf16.msra.mxu0 %v745_v12 }
  0x91   : > { %747 = vmatprep.subr.bf16.mxu0 %v1081_v5 }
  0x94   : > { %749 = vmatpush3.bf16.msra.mxu0 %v748_v15  ;;  %v394_v28 = vld [vmem:[#allocation2] sm:$0xff] }
  0x95   : > { %750 = vmatprep.subr.bf16.mxu0 %v1081_v5 }
  0x98   : > { %752 = vmatpush3.bf16.msra.mxu0 %v751_v18 }
  0x99   : > { %753 = vmatprep.subr.bf16.mxu0 %v1081_v5 }
  0x9c   : > { %755 = vmatpush3.bf16.msra.mxu0 %v754_v21 }
  0x9d   : > { %756 = vmatprep.subr.bf16.mxu0 %v1081_v5 }
  0xa0   : > { %758 = vmatpush3.bf16.msra.mxu0 %v757_v24 }
  0xa1   : > { %759 = vmatprep.subr.bf16.mxu0 %v1081_v5 }
  0xa4   : > { %761 = vmatpush3.bf16.msra.mxu0 %v760_v27 }
  0xa7   : > { %736 = vmatmul.mubr.f32.vlgmr.msra.gmra.mrb[0].mxu0 %v394_v28 }
 0x17a   : > { %v484_v33 = vpop.f32.mrb[0].mxu0 }
 0x17b   : > { %v485_v34 = vadd.f32 %v681_v32, %v484_v33  ;;  %v737_v35 = vpop.f32.mrb[1].mxu0 }
 0x17d   : > { %488 = vst [vmem:[%s287_s16] sm:$0xff] %v485_v34  ;;  %v492_v36 = vsel %vm491_vm8, %v485_v34, -1e+30 }
 0x17e   : > { %494 = vmax.xlane.f32.xlu0 %v492_v36 }
 0x194   : > { %505 = vperm.xlu0 %884, %v493_v37  }
 0x20b   : > { %v495_v38 = vpop.xlane.xlu0 %494 }
 0x20c   : > { %v496_v39 = vsub.f32 %v492_v36, %v495_v38 }
 0x20e   : > { %v497_v40 = vmul.f32 1.442695, %v496_v39 }
 0x210   : > { %885 = vpow2.f32 %v497_v40 }
 0x213   : > { %v506_v41 = vpop.permute.xlu0 %505 }
 0x214   : > { %vm507_vm9 = vcmp.eq.s32.totalorder %v490_v31, %v506_v41 }
 0x215   : > { %v508_v43 = vsel %vm507_vm9, %v492_v36, 0.0 }
 0x21a   : > { %v886_v42 = vpop.eup %885 }
 0x21b   : > { %499 = vadd.xlane.f32.xlu1 %v886_v42 }
 0x21f   : > { %509 = vadd.xlane.f32.xlu1 %v508_v43 }
 0x2a8   : > { %v500_v44 = vpop.xlane.xlu1 %499 }
 0x2a9   : > { %887 = vlog2.f32 %v500_v44 }
 0x2ac   : > { %v510_v48 = vpop.xlane.xlu1 %509 }
 0x2b3   : > { %v888_v45 = vpop.eup %887 }
 0x2b4   : > { %v502_v46 = vmul.f32 0.6931472, %v888_v45 }
 0x2b6   : > { %v503_v47 = vadd.f32 %v502_v46, %v495_v38 }
 0x2b8   : > { %v511_v49 = vsub.f32 %v503_v47, %v510_v48 }
 0x2ba   : > { %513 = vst.msk [vmem:[%s1330_s18] sm:$0xff] %vm512_vm10, %v511_v49 }
 0x2bb PF: > { %s683_s4 = sshll.u32 %s1061_s25, 7  ;;  %s1456_s12 = sld [smem:[#allocation19_spill]] }
 0x2bc   : > { %s532_s29 = sshll.u32 %s287_s16, 4  ;;  %s515_s30 = scalar_lea.sflag [#allocation5], %s285_s13  ;;  %s533_s29 = int_to_ptr.vmem [resolvable:$true] %s532_s29 }
 0x2bd   : > { %s947_s10 = scalar_lea.vmem %s533_s29, 128  ;;  %p1457_p6 = scmp.ne.s32.totalorder %s1439_s11, 0 }
 0x2be   : > { %p948_p3 = scmp.ne.s32.totalorder %s533_s29, %s947_s10  ;;  %s1085_s15 = smov [#allocation8]  }
 0x2bf   : > { %s951_s21 = sshll.u32 %s1085_s15, 4  ;;  %s952_s21 = int_to_ptr.vmem [resolvable:$false] %s951_s21 }
 0x2c0   : > { %p949_p10 = pnand %p948_p3, %p1457_p6  ;;  %s953_s9 = scalar_lea.vmem %s952_s21, 256 }
 0x2c1   : > { %s1349_s14 = scalar_lea.hbm %s1456_s12, %s683_s4  ;;  %p954_p0 = scmp.lt.s32.totalorder %s533_s29, %s952_s21 }
 0x2c2   : > { %p950_p12 = pneg %p949_p10  ;;  %p955_p8 = scmp.lt.s32.totalorder %s953_s9, %s947_s10 }
 0x2c4   : > { %p956_p11 = por %p955_p8, %p954_p0 }
 0x2c6   : > { %p957_p13 = pnand %p956_p11, %p950_p12 }
 0x2c8   : > { %960 = shalt.err (!%p957_p13)
}
 0x2c9   : > { %s961_s25 = scalar_lea.hbm %s1349_s14, 128  ;;  %s965_s7 = scalar_lea.hbm %s1456_s12, 256 }
 0x2ca   : > { %p962_p7 = scmp.ne.s32.totalorder %s1349_s14, %s961_s25  ;;  %p966_p5 = scmp.lt.u32.totalorder %s1349_s14, %s1456_s12 }
 0x2cb   : > { %p967_p4 = scmp.lt.u32.totalorder %s965_s7, %s961_s25  ;;  %p969_p3 = scmp.lt.u32.totalorder %s961_s25, %s1349_s14 }
 0x2cc   : > { %p963_p9 = pnand %p962_p7, %p1457_p6 }
 0x2cd   : > { %p968_p2 = por %p967_p4, %p966_p5 }
 0x2ce   : > { %p964_p1 = pneg %p963_p9 }
 0x2cf   : > { %p970_p10 = por %p969_p3, %p968_p2 }
 0x2d1   : > { %p971_p12 = pnand %p970_p10, %p964_p1 }
 0x2d3   : > { %974 = shalt.err (!%p971_p12)
}
 0x2d4   : > { %769 = dma.vmem_to_hbm [thread:$0]  (%p1457_p6), %s533_s29, 128, %s1349_s14, %s515_s30  }
 0x2d5 PF: > { %s1458_s24 = sld [smem:[#allocation14_spill]]  ;;  %s1459_s1 = sld [smem:[#allocation12_spill]] }
 0x2d6   : > { %s1460_s4 = sld [smem:[#allocation15_spill]] }
 0x2db   : > { %p786_p0 = scmp.ge.s32.totalorder %s1458_s24, 2  ;;  %s547_s6 = sand.u32 1, %s1459_s1  }
 0x2dc   : > { %p1461_p8 = scmp.ne.s32.totalorder %s1460_s4, 0  ;;  %s548_s8 = scalar_lea.sflag [#allocation5], %s547_s6 }
 0x2de   : > { %p780_p11 = pnand %p786_p0, %p1461_p8 }
 0x2e0   : > { %1028 = dma.done.wait (!%p780_p11), %s548_s8, 128  }
 0x2e1   : > { %1030 = vsyncadd (!%p780_p11), %s548_s8, 4294967168  ;;  %s23_s10 = sadd.s32 1, %s1458_s24   ;;  %s1462_s24 = sld [smem:[#allocation13_spill]] }
 0x2e2   : > { %p20_p13 = scmp.ge.s32.totalorder %s23_s10, 12   ;;  %s1463_s11 = sld [smem:[#allocation16_spill]] }
 0x2e3   : > { %s1464_s14 = sld [smem:[#allocation17_spill]]  ;;  %s1465_s18 = smov %s1037_s19 }
 0x2e4   : > { %s1466_s19 = smov %s1041_s20  ;;  %s1467_s20 = smov %s1267_s28 }
 0x2e5   : > { %s1468_s21 = smov %s1049_s22  ;;  %s1469_s22 = smov %s1053_s23 }
 0x2e6   : > { %s1470_s23 = smov %s1272_s26  ;;  %s1471_s25 = smov %s1069_s27 }
 0x2e7   : > { %s1474_s28 = smov %s23_s10  ;;  %22 = sbr.rel (!%p20_p13) target bundleno = 13 (0xd), region = 108 }
 0x2e8   : > { %s1472_s26 = smov %s1463_s11 }
 0x2e9   : > { %s1473_s27 = smov %s1464_s14 }
 0x2ee   :  { %560 = vsyncpa [#allocation4], 1 }
 0x2ef   :  { %562 = vsyncpa [#allocation4 + $0x1], 1 }
 0x2f0   :  { %563 = vsyncpa [#allocation7], 1 }
 0x2f1   :  { %564 = vsyncpa [#allocation5], 1 }
 0x2f2   :  { %566 = vsyncpa [#allocation5 + $0x1], 1 }

// kernel: tpu_custom_call.1
= control target key start
LH: loop header
LB: loop body
LE: loop exit
PB: predicated region body
PF: predicated region fallthrough
CT: control target
= control target key end

     0   :  { %s1409_s0 = inlined_call_operand.hbm [shape: f32[16,40,128], index: 0, kind: input, shape index: {}]   ;;  %s1410_s1 = inlined_call_operand.hbm [shape: f32[128,128], index: 1, kind: input, shape index: {}]   ;;  %s1411_s2 = inlined_call_operand.vmem [shape: f32[1,128], index: 2, kind: input, shape index: {}]   ;;  %s1412_s3 = inlined_call_operand.vmem [shape: s32[16,1], index: 3, kind: input, shape index: {}]   ;;  %s1413_s4 = inlined_call_operand.hbm [shape: f32[16,128], index: 4, kind: output, shape index: {0}]   ;;  %s1414_s5 = inlined_call_operand.vmem [shape: f32[16,1], index: 5, kind: output, shape index: {1}]  }
   0x1   :  { %1431 = sst [smem:[#allocation18_spill]] %s1410_s1 }
   0x2   :  { %1432 = sst [smem:[#allocation19_spill]] %s1413_s4 }
   0x3   :  { %11 = vsyncpa [#allocation4], 0 }
   0x4   :  { %13 = vsyncpa [#allocation4 + $0x1], 0 }
   0x5   :  { %14 = vsyncpa [#allocation7], 0 }
   0x6   :  { %15 = vsyncpa [#allocation5], 0 }
   0x7   :  { %17 = vsyncpa [#allocation5 + $0x1], 0  ;;  %s1116_s18 = smov 0   ;;  %s1118_s19 = smov 0  }
   0x8   :  { %s1120_s20 = smov 0   ;;  %s1122_s21 = smov 0  }
   0x9   :  { %s1124_s22 = smov 0   ;;  %s1126_s23 = smov 0  }
   0xa   :  { %s1128_s24 = smov 0   ;;  %s1130_s25 = smov 0  }
   0xb   :  { %s1132_s26 = smov 0   ;;  %s1134_s27 = smov 0  }
   0xc   :  { %s1136_s28 = smov 0  }
   0xd LB: > { %1433 = sst [smem:[#allocation12_spill]] %s1033_s18  ;;  %s664_s29 = sadd.s32 4294967295, %s1073_s28   ;;  %s1073_s28 = sphi %s1136_s28, %s1474_s28   ;;  %s1069_s27 = sphi %s1134_s27, %s1473_s27   ;;  %s1065_s26 = sphi %s1132_s26, %s1472_s26   ;;  %s1061_s25 = sphi %s1130_s25, %s1471_s25   ;;  %s1057_s24 = sphi %s1128_s24, %s1462_s24   ;;  %s1053_s23 = sphi %s1126_s23, %s1470_s23   ;;  %s1049_s22 = sphi %s1124_s22, %s1469_s22   ;;  %s1045_s21 = sphi %s1122_s21, %s1468_s21   ;;  %s1041_s20 = sphi %s1120_s20, %s1467_s20   ;;  %s1037_s19 = sphi %s1118_s19, %s1466_s19   ;;  %s1033_s18 = sphi %s1116_s18, %s1465_s18  }
   0xe   : > { %1434 = sst [smem:[#allocation13_spill]] %s1065_s26  ;;  %s665_s30 = sadd.s32 4294967294, %s1073_s28  }
   0xf   : > { %1435 = sst [smem:[#allocation14_spill]] %s1073_s28  ;;  %p51_p0 = scmp.ne.s32.totalorder %s1053_s23, %s1049_s22 }
  0x10   : > { %p52_p1 = scmp.eq.s32.totalorder %s1073_s28, 0  ;;  %p57_p2 = scmp.ne.s32.totalorder %s1049_s22, %s1045_s21 }
  0x11   : > { %p1176_p3 = scmp.eq.s32.totalorder %s664_s29, 0  ;;  %p148_p5 = scmp.ne.s32.totalorder %s1041_s20, %s1037_s19 }
  0x12   : > { %p1181_p4 = por %p52_p1, %p51_p0  ;;  %p149_p7 = scmp.eq.s32.totalorder %s664_s29, 9 }
  0x13   : > { %s1436_s7 = scalar_select %p1176_p3, 1, 0 }
  0x14   : > { %p1189_p6 = por %p1176_p3, %p57_p2  ;;  %p154_p8 = scmp.ne.s32.totalorder %s1037_s19, %s1033_s18 }
  0x15   : > { %p155_p9 = scmp.eq.s32.totalorder %s665_s30, 9  ;;  %p1195_p10 = por %p149_p7, %p148_p5 }
  0x16   : > { %s1438_s10 = scalar_select %p1189_p6, 1, 0 }
  0x17   : > { %s1439_s11 = scalar_select %p1195_p10, 1, 0 }
  0x18   : > { %p666_p11 = scmp.ge.s32.totalorder %s1073_s28, 1  ;;  %p1200_p12 = por %p155_p9, %p154_p8 }
  0x19   : > { %p188_p13 = scmp.lt.s32.totalorder %s1073_s28, 11  ;;  %s1075_s14 = smov [#allocation6]  }
  0x1a   : > { %s1440_s12 = scalar_select %p1200_p12, 1, 0 }
  0x1b   : > { %p1205_p0 = pnand %p666_p11, %p188_p13  ;;  %s200_s15 = sshll.u32 %s1075_s14, 4  ;;  %s201_s15 = int_to_ptr.vmem [resolvable:$true] %s200_s15 }
  0x1c   : > { %1441 = sst [smem:[#allocation15_spill]] %s1440_s12  ;;  %p784_p2 = scmp.lt.s32.totalorder %s1073_s28, 10 }
  0x1d   : > { %s1442_s13 = scalar_select %p1205_p0, 1, 0 }
  0x1e   : > { %p771_p1 = pneg %p1205_p0  ;;  %p1220_p7 = pnand %p784_p2, %p1181_p4 }
  0x1f   : > { %s1445_s1 = sld [smem:[#allocation18_spill]] }
  0x20   : > { %p1214_p5 = pnand %p771_p1, %p1176_p3 }
  0x21   : > { %s1444_s17 = scalar_select %p1220_p7, 1, 0 }
  0x22   : > { %p891_p9 = pneg %p1214_p5 }
  0x25   : > { %s889_s30 = scalar_lea.hbm %s1445_s1, 2048 }
  0x26   : > { %p890_p8 = scmp.ne.s32.totalorder %s1445_s1, %s889_s30  ;;  %p896_p1 = scmp.lt.u32.totalorder %s889_s30, %s1445_s1 }
  0x28   : > { %p892_p11 = pnand %p891_p9, %p890_p8 }
  0x2a   : > { %p893_p13 = pneg %p892_p11 }
  0x2c   : > { %p898_p4 = pnand %p896_p1, %p893_p13 }
  0x2e   : > { %901 = shalt.err (!%p898_p4)
}
  0x2f   : > { %s902_s9 = scalar_lea.vmem %s201_s15, 2048  ;;  %p910_p3 = scmp.lt.s32.totalorder %s201_s15, %s201_s15 }
  0x30   : > { %p903_p2 = scmp.ne.s32.totalorder %s201_s15, %s902_s9  ;;  %p911_p6 = scmp.lt.s32.totalorder %s902_s9, %s902_s9 }
  0x32   : > { %p905_p12 = pnand %p903_p2, %p891_p9  ;;  %p912_p0 = por %p911_p6, %p910_p3 }
  0x34   : > { %p906_p10 = pneg %p905_p12 }
  0x36   : > { %p913_p7 = pnand %p912_p0, %p906_p10 }
  0x38   : > { %916 = shalt.err (!%p913_p7)
}
  0x39   : > { %s1425_s6 = smov 128   ;;  %s1426_s8 = smov 8  }
  0x3a   : > { %774 = dma.hbm_to_vmem [thread:$0]  (!%p1214_p5), %s1445_s1, 2048, %s201_s15, [#allocation7], %s1425_s6, %s1425_s6, %s1426_s8  }
  0x3b   : > { %s32_s29 = sadd.s32 1, %s1065_s26  ;;  %s35_s30 = sadd.s32 1, %s1069_s27 }
  0x3c   : > { %p33_p3 = scmp.ge.s32.totalorder %s32_s29, 5  ;;  %s217_s14 = sand.u32 1, %s1053_s23  }
  0x3d   : > { %s669_s9 = sshll.u32 %s217_s14, 6  ;;  %s762_s18 = smul.u32 40, %s1069_s27 }
  0x3e   : > { %s1476_s29 = smov (%p33_p3, %s32_s29), 0  ;;  %s1478_s30 = smov (!%p33_p3, %s35_s30), %s1069_s27 }
  0x3f   : > { %1446 = sst [smem:[#allocation16_spill]] %s1476_s29  ;;  %s40_s16 = ssub.s32 %s1065_s26, %s1476_s29 }
  0x40   : > { %p37_p6 = scmp.ge.s32.totalorder %s1478_s30, 2  ;;  %s221_s28 = scalar_lea.vmem [#allocation3], %s669_s9 }
  0x41   : > { %s230_s15 = sshll.u32 %s221_s28, 4  ;;  %s227_s12 = sadd.s32 %s1065_s26, %s762_s18  ;;  %s1255_s15 = int_to_ptr.vmem [resolvable:$true] %s230_s15 }
  0x42   : > { %s1480_s30 = smov (%p37_p6, %s1478_s30), 0  ;;  %s672_s6 = sshll.u32 %s227_s12, 7 }
  0x43   : > { %1447 = sst [smem:[#allocation17_spill]] %s1480_s30  ;;  %s39_s21 = ssub.s32 %s1069_s27, %s1480_s30 }
  0x44   : > { %s41_s8 = sor.u32 %s40_s16, %s39_s21  ;;  %p136_p10 = scmp.eq.s32.totalorder %s39_s21, 0 }
  0x45   : > { %p42_p12 = scmp.eq.s32.totalorder %s41_s8, 0  ;;  %s1262_s29 = scalar_lea.hbm %s1409_s0, %s672_s6 }
  0x46   : > { %s1448_s9 = sadd.s32 1, %s1041_s20  ;;  %s1449_s18 = sadd.s32 1, %s1053_s23 }
  0x47   : > { %s1267_s28 = scalar_select %p136_p10, %s1041_s20, %s1448_s9  }
  0x48   : > { %s1272_s26 = scalar_select %p42_p12, %s1053_s23, %s1449_s18  }
  0x49   : > { %s1274_s30 = scalar_lea.sflag [#allocation4], %s217_s14  ;;  %s917_s16 = scalar_lea.hbm %s1262_s29, 1024 }
  0x4a   : > { %p918_p0 = scmp.ne.s32.totalorder %s1262_s29, %s917_s16  ;;  %p1450_p5 = scmp.ne.s32.totalorder %s1444_s17, 0 }
  0x4b   : > { %s922_s6 = scalar_lea.hbm %s1409_s0, 10240  ;;  %p923_p11 = scmp.lt.u32.totalorder %s1262_s29, %s1409_s0 }
  0x4c   : > { %p919_p7 = pneg %p1450_p5  ;;  %p924_p13 = scmp.lt.u32.totalorder %s922_s6, %s917_s16 }
  0x4d   : > { %p926_p4 = scmp.lt.u32.totalorder %s917_s16, %s1262_s29 }
  0x4e   : > { %p920_p8 = pnand %p919_p7, %p918_p0  ;;  %p925_p1 = por %p924_p13, %p923_p11 }
  0x50   : > { %p921_p9 = pneg %p920_p8  ;;  %p927_p2 = por %p926_p4, %p925_p1 }
  0x52   : > { %p928_p3 = pnand %p927_p2, %p921_p9 }
  0x54   : > { %931 = shalt.err (!%p928_p3)
}
  0x55   : > { %s932_s14 = scalar_lea.vmem %s1255_s15, 1024  ;;  %s1078_s21 = smov [#allocation3]  }
  0x56   : > { %p933_p6 = scmp.ne.s32.totalorder %s1255_s15, %s932_s14  ;;  %s937_s9 = sshll.u32 %s1078_s21, 4  ;;  %s938_s9 = int_to_ptr.vmem [resolvable:$false] %s937_s9 }
  0x57   : > { %s939_s18 = scalar_lea.vmem %s938_s9, 2048  ;;  %p940_p0 = scmp.lt.s32.totalorder %s1255_s15, %s938_s9 }
  0x58   : > { %p935_p10 = pnand %p933_p6, %p919_p7  ;;  %p941_p8 = scmp.lt.s32.totalorder %s939_s18, %s932_s14 }
  0x5a   : > { %p936_p12 = pneg %p935_p10  ;;  %p942_p11 = por %p941_p8, %p940_p0 }
  0x5c   : > { %p943_p13 = pnand %p942_p11, %p936_p12 }
  0x5e   : > { %946 = shalt.err (!%p943_p13)
}
  0x5f   : > { %s1079_s16 = smov 640   ;;  %s1451_s1 = smov 8  }
  0x60   : > { %s1452_s4 = smov 128   ;;  %p1453_p7 = scmp.ne.s32.totalorder %s1442_s13, 0 }
  0x61   : > { %778 = dma.hbm_to_vmem [thread:$0]  (!%p1450_p5), %s1262_s29, 1024, %s1255_s15, %s1274_s30, %s1079_s16, %s1452_s4, %s1451_s1  }
  0x62   : > { %249 = sbr.rel (%p1453_p7) target bundleno = 725 (0x2d5), region = 36  ;;  %s251_s6 = sand.u32 (!%p1453_p7), 1, %s1049_s22  }
  0x63   : > { %s674_s8 = sshll.u32 (!%p1453_p7), %s251_s6, 6  ;;  %s252_s12 = scalar_lea.sflag (!%p1453_p7), [#allocation4], %s251_s6 }
  0x64   : > { %s255_s14 = scalar_lea.vmem (!%p1453_p7), [#allocation3], %s674_s8  ;;  %p1454_p9 = scmp.ne.s32.totalorder (!%p1453_p7), %s1438_s10, 0 }
  0x69   : > { %1020 = dma.done.wait (%p1454_p9), %s252_s12, 1024  }
  0x6a   : > { %1022 = vsyncadd (%p1454_p9), %s252_s12, 4294966272  ;;  %p1455_p1 = scmp.ne.s32.totalorder %s1436_s7, 0 }
  0x6c   : > { %1024 = dma.done.wait (%p1455_p1), [#allocation7], 2048  }
  0x6d   : > { %1026 = vsyncadd (%p1455_p1), [#allocation7], 4294965248  ;;  %s285_s13 = sand.u32 1, %s1037_s19   ;;  %p295_p5 = scmp.lt.s32.totalorder %s1061_s25, 1 }
  0x6e   : > { %s1319_s17 = sshll.u32 %s285_s13, 3  ;;  %p679_p4 = scmp.ne.s32.totalorder %s1057_s24, 0 }
  0x6f   : > { %s296_s29 = scalar_select %p295_p5, %s1061_s25, 1 }
  0x70   : > { %s287_s16 = scalar_lea.vmem [#allocation8], %s1319_s17  ;;  %306 = sbr.rel (%p679_p4) target bundleno = 119 (0x77), region = 48  ;;  %v1080_v0 = vmov (!%p679_p4), -inf  }
  0x71   : > { %s677_s30 = sshll.u32 %s296_s29, 3  ;;  %307 = vst [vmem:[#allocation2] sm:$0xff] (!%p679_p4), %v1080_v0 }
  0x72   : > { %s1325_s21 = scalar_lea.vmem %s1412_s3, %s677_s30  ;;  %s1330_s18 = scalar_lea.vmem %s1414_s5, %s677_s30 }
  0x77 PF: > { %v309_v1 = vld [vmem:[%s255_s14] sm:$0xff]  ;;  %v310_v2 = vld [vmem:[%s255_s14 + $0x8] sm:$0xff]  ;;  %v311_v3 = vld [vmem:[%s255_s14 + $0x10] sm:$0xff]  ;;  %vm373_vm0 = vcmask 1041409   ;;  %vm375_vm1 = vcmask 1042434   ;;  %vm377_vm2 = vcmask 1043459  }
  0x78   : > { %v312_v4 = vld [vmem:[%s255_s14 + $0x18] sm:$0xff]  ;;  %v313_v5 = vld [vmem:[%s255_s14 + $0x20] sm:$0xff]  ;;  %v317_v6 = vrot.slane %v309_v1, 4  ;;  %v323_v7 = vrot.slane %v310_v2, 4  ;;  %v314_v8 = vld [vmem:[%s255_s14 + $0x28] sm:$0xff]  ;;  %v329_v11 = vrot.slane %v311_v3, 4 }
  0x79   : > { %v315_v9 = vld [vmem:[%s255_s14 + $0x30] sm:$0xff]  ;;  %v316_v10 = vld [vmem:[%s255_s14 + $0x38] sm:$0xff]  ;;  %v335_v12 = vrot.slane %v312_v4, 4  ;;  %v341_v13 = vrot.slane %v313_v5, 4  ;;  %v347_v16 = vrot.slane %v314_v8, 4  ;;  %vm379_vm3 = vcmask 1044484  }
  0x7a   : > { %v318_v14 = vmax.f32 %v309_v1, %v317_v6  ;;  %v324_v15 = vmax.f32 %v310_v2, %v323_v7  ;;  %v353_v17 = vrot.slane %v315_v9, 4  ;;  %v330_v18 = vmax.f32 %v311_v3, %v329_v11  ;;  %v308_v61 = vld [vmem:[#allocation2] sm:$0xff]  ;;  %p680_p2 = scmp.ne.s32.totalorder %s1057_s24, 4 }
  0x7b   : > { %v336_v19 = vmax.f32 %v312_v4, %v335_v12  ;;  %v342_v20 = vmax.f32 %v313_v5, %v341_v13  ;;  %v359_v21 = vrot.slane %v316_v10, 4  ;;  %v348_v24 = vmax.f32 %v314_v8, %v347_v16  ;;  %v395_v2 = vld [vmem:[#allocation6] sm:$0xff] (!%p680_p2)  ;;  %v396_v3 = vld [vmem:[#allocation6 + $0x8] sm:$0xff] (!%p680_p2)  ;;  %v397_v4 = vld [vmem:[#allocation6 + $0x10] sm:$0xff] (!%p680_p2) }
  0x7c   : > { %v319_v22 = vrot.slane %v318_v14, 2  ;;  %v325_v23 = vrot.slane %v324_v15, 2  ;;  %v354_v25 = vmax.f32 %v315_v9, %v353_v17  ;;  %v331_v26 = vrot.slane %v330_v18, 2  ;;  %v398_v7 = vld [vmem:[#allocation6 + $0x18] sm:$0xff] (!%p680_p2)  ;;  %v400_v11 = vld [vmem:[#allocation6 + $0x28] sm:$0xff] (!%p680_p2)  ;;  %v401_v13 = vld [vmem:[#allocation6 + $0x30] sm:$0xff] (!%p680_p2) }
  0x7d   : > { %v337_v27 = vrot.slane %v336_v19, 2  ;;  %v343_v28 = vrot.slane %v342_v20, 2  ;;  %v360_v29 = vmax.f32 %v316_v10, %v359_v21  ;;  %v349_v32 = vrot.slane %v348_v24, 2  ;;  %v399_v10 = vld [vmem:[#allocation6 + $0x20] sm:$0xff] (!%p680_p2)  ;;  %v404_v17 = vld [vmem:[#allocation6 + $0x48] sm:$0xff] (!%p680_p2) }
  0x7e   : > { %v320_v30 = vmax.f32 %v318_v14, %v319_v22  ;;  %v326_v31 = vmax.f32 %v324_v15, %v325_v23  ;;  %v355_v33 = vrot.slane %v354_v25, 2  ;;  %v332_v34 = vmax.f32 %v330_v18, %v331_v26  ;;  %v402_v14 = vld [vmem:[#allocation6 + $0x38] sm:$0xff] (!%p680_p2)  ;;  %v403_v16 = vld [vmem:[#allocation6 + $0x40] sm:$0xff] (!%p680_p2)  ;;  %v408_v23 = vld [vmem:[#allocation6 + $0x68] sm:$0xff] (!%p680_p2) }
  0x7f   : > { %v338_v35 = vmax.f32 %v336_v19, %v337_v27  ;;  %v344_v36 = vmax.f32 %v342_v20, %v343_v28  ;;  %v361_v37 = vrot.slane %v360_v29, 2  ;;  %v350_v40 = vmax.f32 %v348_v24, %v349_v32  ;;  %v405_v19 = vld [vmem:[#allocation6 + $0x50] sm:$0xff] (!%p680_p2)  ;;  %v406_v20 = vld [vmem:[#allocation6 + $0x58] sm:$0xff] (!%p680_p2)  ;;  %v407_v22 = vld [vmem:[#allocation6 + $0x60] sm:$0xff] (!%p680_p2) }
  0x80   : > { %v321_v38 = vrot.slane %v320_v30, 1  ;;  %v327_v39 = vrot.slane %v326_v31, 1  ;;  %v356_v41 = vmax.f32 %v354_v25, %v355_v33  ;;  %v333_v42 = vrot.slane %v332_v34, 1  ;;  %v409_v25 = vld [vmem:[#allocation6 + $0x70] sm:$0xff] (!%p680_p2)  ;;  %v410_v26 = vld [vmem:[#allocation6 + $0x78] sm:$0xff] (!%p680_p2) }
  0x81   : > { %v339_v43 = vrot.slane %v338_v35, 1  ;;  %v345_v44 = vrot.slane %v344_v36, 1  ;;  %v362_v45 = vmax.f32 %v360_v29, %v361_v37  ;;  %v351_v48 = vrot.slane %v350_v40, 1  ;;  %v681_v32 = vld [vmem:[%s1411_s2] ss:$0 sm:$0xff] (!%p680_p2) }
  0x82   : > { %v322_v46 = vmax.f32 %v320_v30, %v321_v38  ;;  %v328_v47 = vmax.f32 %v326_v31, %v327_v39  ;;  %v357_v49 = vrot.slane %v356_v41, 1  ;;  %v334_v50 = vmax.f32 %v332_v34, %v333_v42  ;;  %v493_v37 = vld [vmem:[%s1325_s21] sm:$0xff] (!%p680_p2) }
  0x83   : > { %v340_v51 = vmax.f32 %v338_v35, %v339_v43  ;;  %v346_v52 = vmax.f32 %v344_v36, %v345_v44  ;;  %v363_v53 = vrot.slane %v362_v45, 1  ;;  %v352_v54 = vmax.f32 %v350_v40, %v351_v48 }
  0x84   : > { %v374_v55 = vsel %vm373_vm0, %v328_v47, %v322_v46  ;;  %v358_v56 = vmax.f32 %v356_v41, %v357_v49  ;;  %vm381_vm4 = vcmask 1045509   ;;  %vm383_vm5 = vcmask 1046534  }
  0x85   : > { %v376_v57 = vsel %vm375_vm1, %v334_v50, %v374_v55  ;;  %v364_v58 = vmax.f32 %v362_v45, %v363_v53  ;;  %vm385_vm6 = vcmask 1047559   ;;  %v1081_v5 = vmov (!%p680_p2), 0.0|0.0  }
  0x86   : > { %v378_v59 = vsel %vm377_vm2, %v340_v51, %v376_v57  ;;  %738 = vmatprep.subr.bf16.mxu0 (!%p680_p2), %v1081_v5  ;;  %v739_v6 = vpack.c.bf16 (!%p680_p2), %v396_v3, %v395_v2  ;;  %vm1082_vm7 = vmmov (!%p680_p2), 0   ;;  %v1083_v8 = vmov (!%p680_p2), 0.0  }
  0x87   : > { %v380_v60 = vsel %vm379_vm3, %v346_v52, %v378_v59  ;;  %393 = sbr.rel (%p680_p2) target bundleno = 699 (0x2bb), region = 52  ;;  %735 = vmatprep.mubr.msk.f32.mxu0 (!%p680_p2), %vm1082_vm7, %v1083_v8  ;;  %v742_v9 = vpack.c.bf16 (!%p680_p2), %v398_v7, %v397_v4  ;;  %v745_v12 = vpack.c.bf16 (!%p680_p2), %v400_v11, %v399_v10  ;;  %v748_v15 = vpack.c.bf16 (!%p680_p2), %v402_v14, %v401_v13 }
  0x88   : > { %v382_v62 = vsel %vm381_vm4, %v352_v54, %v380_v60  ;;  %740 = vmatpush3.bf16.msra.mxu0 (!%p680_p2), %v739_v6  ;;  %v751_v18 = vpack.c.bf16 (!%p680_p2), %v404_v17, %v403_v16  ;;  %v754_v21 = vpack.c.bf16 (!%p680_p2), %v406_v20, %v405_v19  ;;  %v757_v24 = vpack.c.bf16 (!%p680_p2), %v408_v23, %v407_v22 }
  0x89   : > { %v384_v63 = vsel %vm383_vm5, %v358_v56, %v382_v62  ;;  %741 = vmatprep.subr.bf16.mxu0 (!%p680_p2), %v1081_v5  ;;  %v760_v27 = vpack.c.bf16 (!%p680_p2), %v410_v26, %v409_v25  ;;  %v1084_v29 = vmov (!%p680_p2), 0   ;;  %v489_v30 = vlaneseq (!%p680_p2) }
  0x8a   : > { %v386_v0 = vsel %vm385_vm6, %v364_v58, %v384_v63  ;;  %884 = vset.pattern.permute.xlu0 (!%p680_p2), %v1084_v29  ;;  %vm512_vm10 = vcmask (!%p680_p2), 7168  }
  0x8b   : > { %v388_v1 = vmax.f32 %v308_v61, %v386_v0  ;;  %v490_v31 = vand.u32 (!%p680_p2), 127, %v489_v30 }
  0x8c   : > { %743 = vmatpush3.bf16.msra.mxu0 (!%p680_p2), %v742_v9 }
  0x8d   : > { %389 = vst [vmem:[#allocation2] sm:$0xff] %v388_v1  ;;  %744 = vmatprep.subr.bf16.mxu0 (!%p680_p2), %v1081_v5  ;;  %vm491_vm8 = vcmp.lt.s32.totalorder (!%p680_p2), %v490_v31, 7 }
  0x90   : > { %746 = vmatpush3.bf16.msra.mxu0 %v745_v12 }
  0x91   : > { %747 = vmatprep.subr.bf16.mxu0 %v1081_v5 }
  0x94   : > { %749 = vmatpush3.bf16.msra.mxu0 %v748_v15  ;;  %v394_v28 = vld [vmem:[#allocation2] sm:$0xff] }
  0x95   : > { %750 = vmatprep.subr.bf16.mxu0 %v1081_v5 }
  0x98   : > { %752 = vmatpush3.bf16.msra.mxu0 %v751_v18 }
  0x99   : > { %753 = vmatprep.subr.bf16.mxu0 %v1081_v5 }
  0x9c   : > { %755 = vmatpush3.bf16.msra.mxu0 %v754_v21 }
  0x9d   : > { %756 = vmatprep.subr.bf16.mxu0 %v1081_v5 }
  0xa0   : > { %758 = vmatpush3.bf16.msra.mxu0 %v757_v24 }
  0xa1   : > { %759 = vmatprep.subr.bf16.mxu0 %v1081_v5 }
  0xa4   : > { %761 = vmatpush3.bf16.msra.mxu0 %v760_v27 }
  0xa7   : > { %736 = vmatmul.mubr.f32.vlgmr.msra.gmra.mrb[0].mxu0 %v394_v28 }
 0x17a   : > { %v484_v33 = vpop.f32.mrb[0].mxu0 }
 0x17b   : > { %v485_v34 = vadd.f32 %v681_v32, %v484_v33  ;;  %v737_v35 = vpop.f32.mrb[1].mxu0 }
 0x17d   : > { %488 = vst [vmem:[%s287_s16] sm:$0xff] %v485_v34  ;;  %v492_v36 = vsel %vm491_vm8, %v485_v34, -1e+30 }
 0x17e   : > { %494 = vmax.xlane.f32.xlu0 %v492_v36 }
 0x194   : > { %505 = vperm.xlu0 %884, %v493_v37  }
 0x20b   : > { %v495_v38 = vpop.xlane.xlu0 %494 }
 0x20c   : > { %v496_v39 = vsub.f32 %v492_v36, %v495_v38 }
 0x20e   : > { %v497_v40 = vmul.f32 1.442695, %v496_v39 }
 0x210   : > { %885 = vpow2.f32 %v497_v40 }
 0x213   : > { %v506_v41 = vpop.permute.xlu0 %505 }
 0x214   : > { %vm507_vm9 = vcmp.eq.s32.totalorder %v490_v31, %v506_v41 }
 0x215   : > { %v508_v43 = vsel %vm507_vm9, %v492_v36, 0.0 }
 0x21a   : > { %v886_v42 = vpop.eup %885 }
 0x21b   : > { %499 = vadd.xlane.f32.xlu1 %v886_v42 }
 0x21f   : > { %509 = vadd.xlane.f32.xlu1 %v508_v43 }
 0x2a8   : > { %v500_v44 = vpop.xlane.xlu1 %499 }
 0x2a9   : > { %887 = vlog2.f32 %v500_v44 }
 0x2ac   : > { %v510_v48 = vpop.xlane.xlu1 %509 }
 0x2b3   : > { %v888_v45 = vpop.eup %887 }
 0x2b4   : > { %v502_v46 = vmul.f32 0.6931472, %v888_v45 }
 0x2b6   : > { %v503_v47 = vadd.f32 %v502_v46, %v495_v38 }
 0x2b8   : > { %v511_v49 = vsub.f32 %v503_v47, %v510_v48 }
 0x2ba   : > { %513 = vst.msk [vmem:[%s1330_s18] sm:$0xff] %vm512_vm10, %v511_v49 }
 0x2bb PF: > { %s683_s4 = sshll.u32 %s1061_s25, 7  ;;  %s1456_s12 = sld [smem:[#allocation19_spill]] }
 0x2bc   : > { %s532_s29 = sshll.u32 %s287_s16, 4  ;;  %s515_s30 = scalar_lea.sflag [#allocation5], %s285_s13  ;;  %s533_s29 = int_to_ptr.vmem [resolvable:$true] %s532_s29 }
 0x2bd   : > { %s947_s10 = scalar_lea.vmem %s533_s29, 128  ;;  %p1457_p6 = scmp.ne.s32.totalorder %s1439_s11, 0 }
 0x2be   : > { %p948_p3 = scmp.ne.s32.totalorder %s533_s29, %s947_s10  ;;  %s1085_s15 = smov [#allocation8]  }
 0x2bf   : > { %s951_s21 = sshll.u32 %s1085_s15, 4  ;;  %s952_s21 = int_to_ptr.vmem [resolvable:$false] %s951_s21 }
 0x2c0   : > { %p949_p10 = pnand %p948_p3, %p1457_p6  ;;  %s953_s9 = scalar_lea.vmem %s952_s21, 256 }
 0x2c1   : > { %s1349_s14 = scalar_lea.hbm %s1456_s12, %s683_s4  ;;  %p954_p0 = scmp.lt.s32.totalorder %s533_s29, %s952_s21 }
 0x2c2   : > { %p950_p12 = pneg %p949_p10  ;;  %p955_p8 = scmp.lt.s32.totalorder %s953_s9, %s947_s10 }
 0x2c4   : > { %p956_p11 = por %p955_p8, %p954_p0 }
 0x2c6   : > { %p957_p13 = pnand %p956_p11, %p950_p12 }
 0x2c8   : > { %960 = shalt.err (!%p957_p13)
}
 0x2c9   : > { %s961_s25 = scalar_lea.hbm %s1349_s14, 128  ;;  %s965_s7 = scalar_lea.hbm %s1456_s12, 256 }
 0x2ca   : > { %p962_p7 = scmp.ne.s32.totalorder %s1349_s14, %s961_s25  ;;  %p966_p5 = scmp.lt.u32.totalorder %s1349_s14, %s1456_s12 }
 0x2cb   : > { %p967_p4 = scmp.lt.u32.totalorder %s965_s7, %s961_s25  ;;  %p969_p3 = scmp.lt.u32.totalorder %s961_s25, %s1349_s14 }
 0x2cc   : > { %p963_p9 = pnand %p962_p7, %p1457_p6 }
 0x2cd   : > { %p968_p2 = por %p967_p4, %p966_p5 }
 0x2ce   : > { %p964_p1 = pneg %p963_p9 }
 0x2cf   : > { %p970_p10 = por %p969_p3, %p968_p2 }
 0x2d1   : > { %p971_p12 = pnand %p970_p10, %p964_p1 }
 0x2d3   : > { %974 = shalt.err (!%p971_p12)
}
 0x2d4   : > { %769 = dma.vmem_to_hbm [thread:$0]  (%p1457_p6), %s533_s29, 128, %s1349_s14, %s515_s30  }
 0x2d5 PF: > { %s1458_s24 = sld [smem:[#allocation14_spill]]  ;;  %s1459_s1 = sld [smem:[#allocation12_spill]] }
 0x2d6   : > { %s1460_s4 = sld [smem:[#allocation15_spill]] }
 0x2db   : > { %p786_p0 = scmp.ge.s32.totalorder %s1458_s24, 2  ;;  %s547_s6 = sand.u32 1, %s1459_s1  }
 0x2dc   : > { %p1461_p8 = scmp.ne.s32.totalorder %s1460_s4, 0  ;;  %s548_s8 = scalar_lea.sflag [#allocation5], %s547_s6 }
 0x2de   : > { %p780_p11 = pnand %p786_p0, %p1461_p8 }
 0x2e0   : > { %1028 = dma.done.wait (!%p780_p11), %s548_s8, 128  }
 0x2e1   : > { %1030 = vsyncadd (!%p780_p11), %s548_s8, 4294967168  ;;  %s23_s10 = sadd.s32 1, %s1458_s24   ;;  %s1462_s24 = sld [smem:[#allocation13_spill]] }
 0x2e2   : > { %p20_p13 = scmp.ge.s32.totalorder %s23_s10, 12   ;;  %s1463_s11 = sld [smem:[#allocation16_spill]] }
 0x2e3   : > { %s1464_s14 = sld [smem:[#allocation17_spill]]  ;;  %s1465_s18 = smov %s1037_s19 }
 0x2e4   : > { %s1466_s19 = smov %s1041_s20  ;;  %s1467_s20 = smov %s1267_s28 }
 0x2e5   : > { %s1468_s21 = smov %s1049_s22  ;;  %s1469_s22 = smov %s1053_s23 }
 0x2e6   : > { %s1470_s23 = smov %s1272_s26  ;;  %s1471_s25 = smov %s1069_s27 }
 0x2e7   : > { %s1474_s28 = smov %s23_s10  ;;  %22 = sbr.rel (!%p20_p13) target bundleno = 13 (0xd), region = 108 }
 0x2e8   : > { %s1472_s26 = smov %s1463_s11 }
 0x2e9   : > { %s1473_s27 = smov %s1464_s14 }
 0x2ee   :  { %560 = vsyncpa [#allocation4], 1 }
 0x2ef   :  { %562 = vsyncpa [#allocation4 + $0x1], 1 }
 0x2f0   :  { %563 = vsyncpa [#allocation7], 1 }
 0x2f1   :  { %564 = vsyncpa [#allocation5], 1 }
 0x2f2   :  { %566 = vsyncpa [#allocation5 + $0x1], 1 }

</bundles_post_ra>
